<compile_context>
chip_gen: v7x
topology: tpu7x:2x2x1
jax: 0.10.0
libtpu: 0.0.40
codegen_flags: <defaults>
</compile_context>

<pallas_src>
import jax
import jax.numpy as jnp
from jax.experimental import pallas as pl
from jax.experimental.pallas import tpu as pltpu


# ----------------------------------------------------------------------------
# Kernel
# ----------------------------------------------------------------------------
def pnet_kernel(
    x_ref,
    w_nn, b_nn, w_op1, b_op1,
    w_nm, b_nm, w_op2, b_op2,
    w_mm, b_mm, w_op3, b_op3,
    w_mp, b_mp, w_op4, b_op4,
    w_pp, b_pp, w_op5, b_op5,
    w_proj, b_proj,
    out_ref,
):
    f32 = jnp.float32
    bf16 = jnp.bfloat16

    def lin(h, w, b):
        # bf16 x bf16 MXU feed, f32 accumulate, f32 bias add on the VPU.
        return jnp.dot(h.astype(bf16), w[...], preferred_element_type=f32) + b[...]

    def sig(z):
        # sigmoid(z) == 0.5*(1 + tanh(z/2)): single EUP op, stable for large |z|.
        return 0.5 * (jnp.tanh(0.5 * z) + 1.0)

    x = x_ref[...]                      # bf16 tile straight from HBM

    # stage 1: node -> node        (ones mixing matrix folded into w_nn / b_nn)
    x = lin(x, w_nn, b_nn)
    o = sig(lin(x, w_op1, b_op1))

    # stage 2: node -> module
    x = lin(jnp.tanh(x), w_nm, b_nm)
    o += sig(lin(x, w_op2, b_op2))

    # stage 3: module -> module
    x = lin(jnp.tanh(x), w_mm, b_mm)
    o += sig(lin(x, w_op3, b_op3))

    # stage 4: module -> pathway
    x = lin(jnp.tanh(x), w_mp, b_mp)
    o += sig(lin(x, w_op4, b_op4))

    # stage 5: pathway -> pathway
    x = lin(jnp.tanh(x), w_pp, b_pp)
    o += sig(lin(x, w_op5, b_op5))

    # stage 6: projection (no mixing matrix)
    o += sig(lin(jnp.tanh(x), w_proj, b_proj))

    # NOTE: padded class lanes carry 6*sigmoid(0)/6 = 0.5; they are sliced off
    # by the wrapper -- do not "fix" this by masking inside the kernel.
    out_ref[...] = o * (1.0 / 6.0)


# ----------------------------------------------------------------------------
# Parameter init (mimics nn.Linear's U(-1/sqrt(in), 1/sqrt(in)))
# ----------------------------------------------------------------------------
def make_params(key, node_num, module_num, pathway_num, class_num):
    params = {}

    def linear(key, fan_in, fan_out):
        kw, kb = jax.random.split(key)
        bound = 1.0 / jnp.sqrt(jnp.float32(fan_in))
        w = jax.random.uniform(kw, (fan_in, fan_out), jnp.float32, -bound, bound)
        b = jax.random.uniform(kb, (1, fan_out), jnp.float32, -bound, bound)
        return w, b

    names_and_dims = [
        ("node_node", node_num, node_num),
        ("node_module", node_num, module_num),
        ("module_module", module_num, module_num),
        ("module_pathway", module_num, pathway_num),
        ("pathway_pathway", pathway_num, pathway_num),
        ("projection", pathway_num, class_num),
        ("op1", node_num, class_num),
        ("op2", module_num, class_num),
        ("op3", module_num, class_num),
        ("op4", pathway_num, class_num),
        ("op5", pathway_num, class_num),
    ]
    keys = jax.random.split(key, len(names_and_dims))
    for k, (name, fi, fo) in zip(keys, names_and_dims):
        params[name] = linear(k, fi, fo)

    # Fixed connectivity matrices: ones, with forward-consistent (square) shapes.
    params["m_nn"] = jnp.ones((node_num, node_num), jnp.float32)
    params["m_nm"] = jnp.ones((module_num, module_num), jnp.float32)
    params["m_mm"] = jnp.ones((module_num, module_num), jnp.float32)
    params["m_mp"] = jnp.ones((pathway_num, pathway_num), jnp.float32)
    params["m_pp"] = jnp.ones((pathway_num, pathway_num), jnp.float32)
    return params


# ----------------------------------------------------------------------------
# Constant folding + padding helpers
# ----------------------------------------------------------------------------
def fold_params(params):
    """Fold the fixed connectivity matrices into the Linear weights (exact):
       (x @ W + b) @ M  ==  x @ (W @ M) + (b @ M)."""
    f32 = jnp.float32

    def fold(name, mname):
        w, b = params[name]
        m = params[mname].astype(f32)
        return w.astype(f32) @ m, b.astype(f32) @ m

    folded = {
        "node_node": fold("node_node", "m_nn"),
        "node_module": fold("node_module", "m_nm"),
        "module_module": fold("module_module", "m_mm"),
        "module_pathway": fold("module_pathway", "m_mp"),
        "pathway_pathway": fold("pathway_pathway", "m_pp"),
    }
    for name in ("projection", "op1", "op2", "op3", "op4", "op5"):
        w, b = params[name]
        folded[name] = (w.astype(f32), b.astype(f32))
    return folded


def _round_up(n, m):
    return ((n + m - 1) // m) * m


def _pad2d(a, rows, cols):
    pr, pc = rows - a.shape[0], cols - a.shape[1]
    if pr == 0 and pc == 0:
        return a
    return jnp.pad(a, ((0, pr), (0, pc)))


# ----------------------------------------------------------------------------
# Wrapper: fold, pad to TPU-friendly shapes, grid over batch
# ----------------------------------------------------------------------------
def pnet_improve_forward(x, params, *, batch_tile=256, core_parallel=False,
                         vmem_limit_bytes=32 << 20):
    """batch_tile: 256 for v6e/v7x (fills the 256-wide MXU M dim); use 128 on
    v5e.  core_parallel=True on v7x when the batch grid has >= 2 tiles.
    vmem_limit_bytes: 32 MiB default; ~64 MiB is fine on v6e (128 MiB part),
    but do not push toward 64 MiB on v7x (that is its entire per-TC VMEM)."""
    B, node_num = x.shape
    module_num = params["module_module"][0].shape[0]
    pathway_num = params["pathway_pathway"][0].shape[0]
    class_num = params["projection"][0].shape[1]

    bf16 = jnp.bfloat16
    folded = fold_params(params)

    # --- lane-dense padding (feature dims -> multiples of 128) ---------------
    node_p = _round_up(node_num, 128)
    mod_p = _round_up(module_num, 128)
    path_p = _round_up(pathway_num, 128)
    cls_p = _round_up(class_num, 128)

    def wpad(name, rows, cols):
        w, b = folded[name]
        # Weights go to bf16 (MXU feed); biases stay f32 (added after the
        # f32-accumulated dot).
        return (_pad2d(w.astype(bf16), rows, cols), _pad2d(b, 1, cols))

    weights = [
        wpad("node_node", node_p, node_p),
        wpad("op1", node_p, cls_p),
        wpad("node_module", node_p, mod_p),
        wpad("op2", mod_p, cls_p),
        wpad("module_module", mod_p, mod_p),
        wpad("op3", mod_p, cls_p),
        wpad("module_pathway", mod_p, path_p),
        wpad("op4", path_p, cls_p),
        wpad("pathway_pathway", path_p, path_p),
        wpad("op5", path_p, cls_p),
        wpad("projection", path_p, cls_p),
    ]

    # --- batch padding + tiling ----------------------------------------------
    assert batch_tile % 8 == 0, "batch_tile must be a multiple of 8"
    if B <= batch_tile:
        tb = _round_up(B, 8)          # single tile; block == full array dims
    else:
        tb = batch_tile
    b_pad = _round_up(B, tb)
    x_p = _pad2d(x.astype(bf16), b_pad, node_p)   # bf16 x: halves x DMA
    grid = (b_pad // tb,)

    # --- specs ----------------------------------------------------------------
    # x / out stream with the grid; weights/biases are grid-invariant and
    # single-buffered (constant index_map => they never re-DMA, double
    # buffering them only wastes VMEM).
    resident = dict(pipeline_mode=pl.Buffered(1))
    in_specs = [pl.BlockSpec((tb, node_p), lambda i: (i, 0))]
    args = [x_p]
    for w, b in weights:
        in_specs.append(pl.BlockSpec(w.shape, lambda i: (0, 0), **resident))
        in_specs.append(pl.BlockSpec(b.shape, lambda i: (0, 0), **resident))
        args.append(w)
        args.append(b)
    out_spec = pl.BlockSpec((tb, cls_p), lambda i: (i, 0))

    batch_sem = pltpu.CORE_PARALLEL if core_parallel else "parallel"

    out = pl.pallas_call(
        pnet_kernel,
        out_shape=jax.ShapeDtypeStruct((b_pad, cls_p), jnp.float32),
        grid=grid,
        in_specs=in_specs,
        out_specs=out_spec,
        compiler_params=pltpu.CompilerParams(
            dimension_semantics=(batch_sem,),
            vmem_limit_bytes=vmem_limit_bytes,
        ),
    )(*args)

    return out[:B, :class_num]


# ----------------------------------------------------------------------------
# References
# ----------------------------------------------------------------------------
def pnet_improve_reference(x, params):
    """Pure-JAX f32 mirror of the PyTorch forward (unfolded, unpadded)."""
    def lin(h, name):
        w, b = params[name]
        return h @ w + b

    def sig(z):
        return 1.0 / (1.0 + jnp.exp(-z))

    x = lin(x, "node_node") @ params["m_nn"]
    o1 = sig(lin(x, "op1"))
    x = lin(jnp.tanh(x), "node_module") @ params["m_nm"]
    o2 = sig(lin(x, "op2"))
    x = lin(jnp.tanh(x), "module_module") @ params["m_mm"]
    o3 = sig(lin(x, "op3"))
    x = lin(jnp.tanh(x), "module_pathway") @ params["m_mp"]
    o4 = sig(lin(x, "op4"))
    x = lin(jnp.tanh(x), "pathway_pathway") @ params["m_pp"]
    o5 = sig(lin(x, "op5"))
    o6 = sig(lin(jnp.tanh(x), "projection"))
    return (o1 + o2 + o3 + o4 + o5 + o6) / 6.0


def pnet_improve_folded_bf16_reference(x, folded):
    """Mirrors the kernel numerics (folded weights, bf16 MXU feed, f32 accum,
    tanh-form sigmoid) without padding/tiling; checks the Pallas plumbing."""
    f32, bf16 = jnp.float32, jnp.bfloat16

    def lin(h, name):
        w, b = folded[name]
        return jnp.dot(h.astype(bf16), w.astype(bf16),
                       preferred_element_type=f32) + b

    def sig(z):
        return 0.5 * (jnp.tanh(0.5 * z) + 1.0)

    x = x.astype(bf16)
    x = lin(x, "node_node");            o = sig(lin(x, "op1"))
    x = lin(jnp.tanh(x), "node_module");     o += sig(lin(x, "op2"))
    x = lin(jnp.tanh(x), "module_module");   o += sig(lin(x, "op3"))
    x = lin(jnp.tanh(x), "module_pathway");  o += sig(lin(x, "op4"))
    x = lin(jnp.tanh(x), "pathway_pathway"); o += sig(lin(x, "op5"))
    o += sig(lin(jnp.tanh(x), "projection"))
    return o / 6.0


if __name__ == "__main__":
    # Small shapes consistent with data_size = {node_num, module_num,
    # pathway_num, class_num}.
    B, NODE, MODULE, PATHWAY, CLASS = 4, 64, 32, 16, 8

    key = jax.random.PRNGKey(0)
    k_in, k_params = jax.random.split(key)
    x = jax.random.normal(k_in, (B, NODE), jnp.float32)
    params = make_params(k_params, NODE, MODULE, PATHWAY, CLASS)

    out = pnet_improve_forward(x, params)
    out = jax.block_until_ready(out)
    assert out.shape == (B, CLASS)

    # Tight check against a reference that mirrors the kernel numerics exactly
    # (constant folding + bf16 MXU feed): verifies padding / tiling / specs.
    ref_mirror = pnet_improve_folded_bf16_reference(x, fold_params(params))
    assert jnp.allclose(out, ref_mirror, atol=2e-3, rtol=2e-3), (
        f"mirror max abs err {jnp.max(jnp.abs(out - ref_mirror))}"
    )

    # Looser check against the f32 PyTorch-semantics reference; bf16 MXU feed
    # and the W@M sum reassociation bound the difference at these sizes.
    ref_f32 = pnet_improve_reference(x, params)
    assert jnp.allclose(out, ref_f32, atol=5e-2, rtol=5e-2), (
        f"f32-ref max abs err {jnp.max(jnp.abs(out - ref_f32))}"
    )

    print("KERNEL_OK")
</pallas_src>

<mosaic_0001>
module attributes {stable_mosaic.version = 11 : i64} {
  func.func @pnet_kernel(%arg0: i32, %arg1: memref<8x128xbf16, #tpu.memory_space<vmem>>, %arg2: memref<128x128xbf16, #tpu.memory_space<vmem>>, %arg3: memref<1x128xf32, #tpu.memory_space<vmem>>, %arg4: memref<128x128xbf16, #tpu.memory_space<vmem>>, %arg5: memref<1x128xf32, #tpu.memory_space<vmem>>, %arg6: memref<128x128xbf16, #tpu.memory_space<vmem>>, %arg7: memref<1x128xf32, #tpu.memory_space<vmem>>, %arg8: memref<128x128xbf16, #tpu.memory_space<vmem>>, %arg9: memref<1x128xf32, #tpu.memory_space<vmem>>, %arg10: memref<128x128xbf16, #tpu.memory_space<vmem>>, %arg11: memref<1x128xf32, #tpu.memory_space<vmem>>, %arg12: memref<128x128xbf16, #tpu.memory_space<vmem>>, %arg13: memref<1x128xf32, #tpu.memory_space<vmem>>, %arg14: memref<128x128xbf16, #tpu.memory_space<vmem>>, %arg15: memref<1x128xf32, #tpu.memory_space<vmem>>, %arg16: memref<128x128xbf16, #tpu.memory_space<vmem>>, %arg17: memref<1x128xf32, #tpu.memory_space<vmem>>, %arg18: memref<128x128xbf16, #tpu.memory_space<vmem>>, %arg19: memref<1x128xf32, #tpu.memory_space<vmem>>, %arg20: memref<128x128xbf16, #tpu.memory_space<vmem>>, %arg21: memref<1x128xf32, #tpu.memory_space<vmem>>, %arg22: memref<128x128xbf16, #tpu.memory_space<vmem>>, %arg23: memref<1x128xf32, #tpu.memory_space<vmem>>, %arg24: memref<8x128xf32, #tpu.memory_space<vmem>>) attributes {dimension_semantics = [#tpu.dimension_semantics<parallel>], iteration_bounds = array<i64: 1>, scalar_prefetch = 0 : i64, scratch_operands = 0 : i64, tpu.core_type = #tpu.core_type<tc>, window_params = [{transform_indices = @transform_0, window_bounds = array<i64: 8, 128>}, {pipeline_mode = #tpu.pipeline_mode<synchronous>, transform_indices = @transform_1, window_bounds = array<i64: 128, 128>}, {pipeline_mode = #tpu.pipeline_mode<synchronous>, transform_indices = @transform_2, window_bounds = array<i64: 1, 128>}, {pipeline_mode = #tpu.pipeline_mode<synchronous>, transform_indices = @transform_3, window_bounds = array<i64: 128, 128>}, {pipeline_mode = #tpu.pipeline_mode<synchronous>, transform_indices = @transform_4, window_bounds = array<i64: 1, 128>}, {pipeline_mode = #tpu.pipeline_mode<synchronous>, transform_indices = @transform_5, window_bounds = array<i64: 128, 128>}, {pipeline_mode = #tpu.pipeline_mode<synchronous>, transform_indices = @transform_6, window_bounds = array<i64: 1, 128>}, {pipeline_mode = #tpu.pipeline_mode<synchronous>, transform_indices = @transform_7, window_bounds = array<i64: 128, 128>}, {pipeline_mode = #tpu.pipeline_mode<synchronous>, transform_indices = @transform_8, window_bounds = array<i64: 1, 128>}, {pipeline_mode = #tpu.pipeline_mode<synchronous>, transform_indices = @transform_9, window_bounds = array<i64: 128, 128>}, {pipeline_mode = #tpu.pipeline_mode<synchronous>, transform_indices = @transform_10, window_bounds = array<i64: 1, 128>}, {pipeline_mode = #tpu.pipeline_mode<synchronous>, transform_indices = @transform_11, window_bounds = array<i64: 128, 128>}, {pipeline_mode = #tpu.pipeline_mode<synchronous>, transform_indices = @transform_12, window_bounds = array<i64: 1, 128>}, {pipeline_mode = #tpu.pipeline_mode<synchronous>, transform_indices = @transform_13, window_bounds = array<i64: 128, 128>}, {pipeline_mode = #tpu.pipeline_mode<synchronous>, transform_indices = @transform_14, window_bounds = array<i64: 1, 128>}, {pipeline_mode = #tpu.pipeline_mode<synchronous>, transform_indices = @transform_15, window_bounds = array<i64: 128, 128>}, {pipeline_mode = #tpu.pipeline_mode<synchronous>, transform_indices = @transform_16, window_bounds = array<i64: 1, 128>}, {pipeline_mode = #tpu.pipeline_mode<synchronous>, transform_indices = @transform_17, window_bounds = array<i64: 128, 128>}, {pipeline_mode = #tpu.pipeline_mode<synchronous>, transform_indices = @transform_18, window_bounds = array<i64: 1, 128>}, {pipeline_mode = #tpu.pipeline_mode<synchronous>, transform_indices = @transform_19, window_bounds = array<i64: 128, 128>}, {pipeline_mode = #tpu.pipeline_mode<synchronous>, transform_indices = @transform_20, window_bounds = array<i64: 1, 128>}, {pipeline_mode = #tpu.pipeline_mode<synchronous>, transform_indices = @transform_21, window_bounds = array<i64: 128, 128>}, {pipeline_mode = #tpu.pipeline_mode<synchronous>, transform_indices = @transform_22, window_bounds = array<i64: 1, 128>}, {transform_indices = @transform_23, window_bounds = array<i64: 8, 128>}]} {
    %c0 = arith.constant 0 : index
    %c0_0 = arith.constant 0 : index
    %0 = vector.load %arg1[%c0, %c0_0] : memref<8x128xbf16, #tpu.memory_space<vmem>>, vector<8x128xbf16>
    %c0_1 = arith.constant 0 : index
    %c0_2 = arith.constant 0 : index
    %1 = vector.load %arg2[%c0_1, %c0_2] : memref<128x128xbf16, #tpu.memory_space<vmem>>, vector<128x128xbf16>
    %cst = arith.constant dense<0.000000e+00> : vector<8x128xf32>
    %2 = tpu.matmul %0, %1, %cst {dimension_numbers = #tpu.dot_dimension_numbers<[1], [0], [0], [1], [0, 0, 1, 1], [], []>} : vector<8x128xbf16>, vector<128x128xbf16>, vector<8x128xf32> -> vector<8x128xf32>
    %c0_3 = arith.constant 0 : index
    %c0_4 = arith.constant 0 : index
    %3 = vector.load %arg3[%c0_3, %c0_4] : memref<1x128xf32, #tpu.memory_space<vmem>>, vector<1x128xf32>
    %4 = vector.broadcast %3 : vector<1x128xf32> to vector<8x128xf32>
    %5 = arith.addf %2, %4 : vector<8x128xf32>
    %6 = arith.truncf %5 : vector<8x128xf32> to vector<8x128xbf16>
    %c0_5 = arith.constant 0 : index
    %c0_6 = arith.constant 0 : index
    %7 = vector.load %arg4[%c0_5, %c0_6] : memref<128x128xbf16, #tpu.memory_space<vmem>>, vector<128x128xbf16>
    %cst_7 = arith.constant dense<0.000000e+00> : vector<8x128xf32>
    %8 = tpu.matmul %6, %7, %cst_7 {dimension_numbers = #tpu.dot_dimension_numbers<[1], [0], [0], [1], [0, 0, 1, 1], [], []>} : vector<8x128xbf16>, vector<128x128xbf16>, vector<8x128xf32> -> vector<8x128xf32>
    %c0_8 = arith.constant 0 : index
    %c0_9 = arith.constant 0 : index
    %9 = vector.load %arg5[%c0_8, %c0_9] : memref<1x128xf32, #tpu.memory_space<vmem>>, vector<1x128xf32>
    %10 = vector.broadcast %9 : vector<1x128xf32> to vector<8x128xf32>
    %11 = arith.addf %8, %10 : vector<8x128xf32>
    %cst_10 = arith.constant 5.000000e-01 : f32
    %12 = vector.broadcast %cst_10 : f32 to vector<8x128xf32>
    %13 = arith.mulf %12, %11 : vector<8x128xf32>
    %14 = math.tanh %13 : vector<8x128xf32>
    %cst_11 = arith.constant 1.000000e+00 : f32
    %15 = vector.broadcast %cst_11 : f32 to vector<8x128xf32>
    %16 = arith.addf %14, %15 : vector<8x128xf32>
    %cst_12 = arith.constant 5.000000e-01 : f32
    %17 = vector.broadcast %cst_12 : f32 to vector<8x128xf32>
    %18 = arith.mulf %17, %16 : vector<8x128xf32>
    %19 = math.tanh %5 : vector<8x128xf32>
    %20 = arith.truncf %19 : vector<8x128xf32> to vector<8x128xbf16>
    %c0_13 = arith.constant 0 : index
    %c0_14 = arith.constant 0 : index
    %21 = vector.load %arg6[%c0_13, %c0_14] : memref<128x128xbf16, #tpu.memory_space<vmem>>, vector<128x128xbf16>
    %cst_15 = arith.constant dense<0.000000e+00> : vector<8x128xf32>
    %22 = tpu.matmul %20, %21, %cst_15 {dimension_numbers = #tpu.dot_dimension_numbers<[1], [0], [0], [1], [0, 0, 1, 1], [], []>} : vector<8x128xbf16>, vector<128x128xbf16>, vector<8x128xf32> -> vector<8x128xf32>
    %c0_16 = arith.constant 0 : index
    %c0_17 = arith.constant 0 : index
    %23 = vector.load %arg7[%c0_16, %c0_17] : memref<1x128xf32, #tpu.memory_space<vmem>>, vector<1x128xf32>
    %24 = vector.broadcast %23 : vector<1x128xf32> to vector<8x128xf32>
    %25 = arith.addf %22, %24 : vector<8x128xf32>
    %26 = arith.truncf %25 : vector<8x128xf32> to vector<8x128xbf16>
    %c0_18 = arith.constant 0 : index
    %c0_19 = arith.constant 0 : index
    %27 = vector.load %arg8[%c0_18, %c0_19] : memref<128x128xbf16, #tpu.memory_space<vmem>>, vector<128x128xbf16>
    %cst_20 = arith.constant dense<0.000000e+00> : vector<8x128xf32>
    %28 = tpu.matmul %26, %27, %cst_20 {dimension_numbers = #tpu.dot_dimension_numbers<[1], [0], [0], [1], [0, 0, 1, 1], [], []>} : vector<8x128xbf16>, vector<128x128xbf16>, vector<8x128xf32> -> vector<8x128xf32>
    %c0_21 = arith.constant 0 : index
    %c0_22 = arith.constant 0 : index
    %29 = vector.load %arg9[%c0_21, %c0_22] : memref<1x128xf32, #tpu.memory_space<vmem>>, vector<1x128xf32>
    %30 = vector.broadcast %29 : vector<1x128xf32> to vector<8x128xf32>
    %31 = arith.addf %28, %30 : vector<8x128xf32>
    %cst_23 = arith.constant 5.000000e-01 : f32
    %32 = vector.broadcast %cst_23 : f32 to vector<8x128xf32>
    %33 = arith.mulf %32, %31 : vector<8x128xf32>
    %34 = math.tanh %33 : vector<8x128xf32>
    %cst_24 = arith.constant 1.000000e+00 : f32
    %35 = vector.broadcast %cst_24 : f32 to vector<8x128xf32>
    %36 = arith.addf %34, %35 : vector<8x128xf32>
    %cst_25 = arith.constant 5.000000e-01 : f32
    %37 = vector.broadcast %cst_25 : f32 to vector<8x128xf32>
    %38 = arith.mulf %37, %36 : vector<8x128xf32>
    %39 = arith.addf %18, %38 : vector<8x128xf32>
    %40 = math.tanh %25 : vector<8x128xf32>
    %41 = arith.truncf %40 : vector<8x128xf32> to vector<8x128xbf16>
    %c0_26 = arith.constant 0 : index
    %c0_27 = arith.constant 0 : index
    %42 = vector.load %arg10[%c0_26, %c0_27] : memref<128x128xbf16, #tpu.memory_space<vmem>>, vector<128x128xbf16>
    %cst_28 = arith.constant dense<0.000000e+00> : vector<8x128xf32>
    %43 = tpu.matmul %41, %42, %cst_28 {dimension_numbers = #tpu.dot_dimension_numbers<[1], [0], [0], [1], [0, 0, 1, 1], [], []>} : vector<8x128xbf16>, vector<128x128xbf16>, vector<8x128xf32> -> vector<8x128xf32>
    %c0_29 = arith.constant 0 : index
    %c0_30 = arith.constant 0 : index
    %44 = vector.load %arg11[%c0_29, %c0_30] : memref<1x128xf32, #tpu.memory_space<vmem>>, vector<1x128xf32>
    %45 = vector.broadcast %44 : vector<1x128xf32> to vector<8x128xf32>
    %46 = arith.addf %43, %45 : vector<8x128xf32>
    %47 = arith.truncf %46 : vector<8x128xf32> to vector<8x128xbf16>
    %c0_31 = arith.constant 0 : index
    %c0_32 = arith.constant 0 : index
    %48 = vector.load %arg12[%c0_31, %c0_32] : memref<128x128xbf16, #tpu.memory_space<vmem>>, vector<128x128xbf16>
    %cst_33 = arith.constant dense<0.000000e+00> : vector<8x128xf32>
    %49 = tpu.matmul %47, %48, %cst_33 {dimension_numbers = #tpu.dot_dimension_numbers<[1], [0], [0], [1], [0, 0, 1, 1], [], []>} : vector<8x128xbf16>, vector<128x128xbf16>, vector<8x128xf32> -> vector<8x128xf32>
    %c0_34 = arith.constant 0 : index
    %c0_35 = arith.constant 0 : index
    %50 = vector.load %arg13[%c0_34, %c0_35] : memref<1x128xf32, #tpu.memory_space<vmem>>, vector<1x128xf32>
    %51 = vector.broadcast %50 : vector<1x128xf32> to vector<8x128xf32>
    %52 = arith.addf %49, %51 : vector<8x128xf32>
    %cst_36 = arith.constant 5.000000e-01 : f32
    %53 = vector.broadcast %cst_36 : f32 to vector<8x128xf32>
    %54 = arith.mulf %53, %52 : vector<8x128xf32>
    %55 = math.tanh %54 : vector<8x128xf32>
    %cst_37 = arith.constant 1.000000e+00 : f32
    %56 = vector.broadcast %cst_37 : f32 to vector<8x128xf32>
    %57 = arith.addf %55, %56 : vector<8x128xf32>
    %cst_38 = arith.constant 5.000000e-01 : f32
    %58 = vector.broadcast %cst_38 : f32 to vector<8x128xf32>
    %59 = arith.mulf %58, %57 : vector<8x128xf32>
    %60 = arith.addf %39, %59 : vector<8x128xf32>
    %61 = math.tanh %46 : vector<8x128xf32>
    %62 = arith.truncf %61 : vector<8x128xf32> to vector<8x128xbf16>
    %c0_39 = arith.constant 0 : index
    %c0_40 = arith.constant 0 : index
    %63 = vector.load %arg14[%c0_39, %c0_40] : memref<128x128xbf16, #tpu.memory_space<vmem>>, vector<128x128xbf16>
    %cst_41 = arith.constant dense<0.000000e+00> : vector<8x128xf32>
    %64 = tpu.matmul %62, %63, %cst_41 {dimension_numbers = #tpu.dot_dimension_numbers<[1], [0], [0], [1], [0, 0, 1, 1], [], []>} : vector<8x128xbf16>, vector<128x128xbf16>, vector<8x128xf32> -> vector<8x128xf32>
    %c0_42 = arith.constant 0 : index
    %c0_43 = arith.constant 0 : index
    %65 = vector.load %arg15[%c0_42, %c0_43] : memref<1x128xf32, #tpu.memory_space<vmem>>, vector<1x128xf32>
    %66 = vector.broadcast %65 : vector<1x128xf32> to vector<8x128xf32>
    %67 = arith.addf %64, %66 : vector<8x128xf32>
    %68 = arith.truncf %67 : vector<8x128xf32> to vector<8x128xbf16>
    %c0_44 = arith.constant 0 : index
    %c0_45 = arith.constant 0 : index
    %69 = vector.load %arg16[%c0_44, %c0_45] : memref<128x128xbf16, #tpu.memory_space<vmem>>, vector<128x128xbf16>
    %cst_46 = arith.constant dense<0.000000e+00> : vector<8x128xf32>
    %70 = tpu.matmul %68, %69, %cst_46 {dimension_numbers = #tpu.dot_dimension_numbers<[1], [0], [0], [1], [0, 0, 1, 1], [], []>} : vector<8x128xbf16>, vector<128x128xbf16>, vector<8x128xf32> -> vector<8x128xf32>
    %c0_47 = arith.constant 0 : index
    %c0_48 = arith.constant 0 : index
    %71 = vector.load %arg17[%c0_47, %c0_48] : memref<1x128xf32, #tpu.memory_space<vmem>>, vector<1x128xf32>
    %72 = vector.broadcast %71 : vector<1x128xf32> to vector<8x128xf32>
    %73 = arith.addf %70, %72 : vector<8x128xf32>
    %cst_49 = arith.constant 5.000000e-01 : f32
    %74 = vector.broadcast %cst_49 : f32 to vector<8x128xf32>
    %75 = arith.mulf %74, %73 : vector<8x128xf32>
    %76 = math.tanh %75 : vector<8x128xf32>
    %cst_50 = arith.constant 1.000000e+00 : f32
    %77 = vector.broadcast %cst_50 : f32 to vector<8x128xf32>
    %78 = arith.addf %76, %77 : vector<8x128xf32>
    %cst_51 = arith.constant 5.000000e-01 : f32
    %79 = vector.broadcast %cst_51 : f32 to vector<8x128xf32>
    %80 = arith.mulf %79, %78 : vector<8x128xf32>
    %81 = arith.addf %60, %80 : vector<8x128xf32>
    %82 = math.tanh %67 : vector<8x128xf32>
    %83 = arith.truncf %82 : vector<8x128xf32> to vector<8x128xbf16>
    %c0_52 = arith.constant 0 : index
    %c0_53 = arith.constant 0 : index
    %84 = vector.load %arg18[%c0_52, %c0_53] : memref<128x128xbf16, #tpu.memory_space<vmem>>, vector<128x128xbf16>
    %cst_54 = arith.constant dense<0.000000e+00> : vector<8x128xf32>
    %85 = tpu.matmul %83, %84, %cst_54 {dimension_numbers = #tpu.dot_dimension_numbers<[1], [0], [0], [1], [0, 0, 1, 1], [], []>} : vector<8x128xbf16>, vector<128x128xbf16>, vector<8x128xf32> -> vector<8x128xf32>
    %c0_55 = arith.constant 0 : index
    %c0_56 = arith.constant 0 : index
    %86 = vector.load %arg19[%c0_55, %c0_56] : memref<1x128xf32, #tpu.memory_space<vmem>>, vector<1x128xf32>
    %87 = vector.broadcast %86 : vector<1x128xf32> to vector<8x128xf32>
    %88 = arith.addf %85, %87 : vector<8x128xf32>
    %89 = arith.truncf %88 : vector<8x128xf32> to vector<8x128xbf16>
    %c0_57 = arith.constant 0 : index
    %c0_58 = arith.constant 0 : index
    %90 = vector.load %arg20[%c0_57, %c0_58] : memref<128x128xbf16, #tpu.memory_space<vmem>>, vector<128x128xbf16>
    %cst_59 = arith.constant dense<0.000000e+00> : vector<8x128xf32>
    %91 = tpu.matmul %89, %90, %cst_59 {dimension_numbers = #tpu.dot_dimension_numbers<[1], [0], [0], [1], [0, 0, 1, 1], [], []>} : vector<8x128xbf16>, vector<128x128xbf16>, vector<8x128xf32> -> vector<8x128xf32>
    %c0_60 = arith.constant 0 : index
    %c0_61 = arith.constant 0 : index
    %92 = vector.load %arg21[%c0_60, %c0_61] : memref<1x128xf32, #tpu.memory_space<vmem>>, vector<1x128xf32>
    %93 = vector.broadcast %92 : vector<1x128xf32> to vector<8x128xf32>
    %94 = arith.addf %91, %93 : vector<8x128xf32>
    %cst_62 = arith.constant 5.000000e-01 : f32
    %95 = vector.broadcast %cst_62 : f32 to vector<8x128xf32>
    %96 = arith.mulf %95, %94 : vector<8x128xf32>
    %97 = math.tanh %96 : vector<8x128xf32>
    %cst_63 = arith.constant 1.000000e+00 : f32
    %98 = vector.broadcast %cst_63 : f32 to vector<8x128xf32>
    %99 = arith.addf %97, %98 : vector<8x128xf32>
    %cst_64 = arith.constant 5.000000e-01 : f32
    %100 = vector.broadcast %cst_64 : f32 to vector<8x128xf32>
    %101 = arith.mulf %100, %99 : vector<8x128xf32>
    %102 = arith.addf %81, %101 : vector<8x128xf32>
    %103 = math.tanh %88 : vector<8x128xf32>
    %104 = arith.truncf %103 : vector<8x128xf32> to vector<8x128xbf16>
    %c0_65 = arith.constant 0 : index
    %c0_66 = arith.constant 0 : index
    %105 = vector.load %arg22[%c0_65, %c0_66] : memref<128x128xbf16, #tpu.memory_space<vmem>>, vector<128x128xbf16>
    %cst_67 = arith.constant dense<0.000000e+00> : vector<8x128xf32>
    %106 = tpu.matmul %104, %105, %cst_67 {dimension_numbers = #tpu.dot_dimension_numbers<[1], [0], [0], [1], [0, 0, 1, 1], [], []>} : vector<8x128xbf16>, vector<128x128xbf16>, vector<8x128xf32> -> vector<8x128xf32>
    %c0_68 = arith.constant 0 : index
    %c0_69 = arith.constant 0 : index
    %107 = vector.load %arg23[%c0_68, %c0_69] : memref<1x128xf32, #tpu.memory_space<vmem>>, vector<1x128xf32>
    %108 = vector.broadcast %107 : vector<1x128xf32> to vector<8x128xf32>
    %109 = arith.addf %106, %108 : vector<8x128xf32>
    %cst_70 = arith.constant 5.000000e-01 : f32
    %110 = vector.broadcast %cst_70 : f32 to vector<8x128xf32>
    %111 = arith.mulf %110, %109 : vector<8x128xf32>
    %112 = math.tanh %111 : vector<8x128xf32>
    %cst_71 = arith.constant 1.000000e+00 : f32
    %113 = vector.broadcast %cst_71 : f32 to vector<8x128xf32>
    %114 = arith.addf %112, %113 : vector<8x128xf32>
    %cst_72 = arith.constant 5.000000e-01 : f32
    %115 = vector.broadcast %cst_72 : f32 to vector<8x128xf32>
    %116 = arith.mulf %115, %114 : vector<8x128xf32>
    %117 = arith.addf %102, %116 : vector<8x128xf32>
    %cst_73 = arith.constant 0.166666672 : f32
    %118 = vector.broadcast %cst_73 : f32 to vector<8x128xf32>
    %119 = arith.mulf %117, %118 : vector<8x128xf32>
    %c0_74 = arith.constant 0 : index
    %c0_75 = arith.constant 0 : index
    %120 = vector.load %arg24[%c0_74, %c0_75] : memref<8x128xf32, #tpu.memory_space<vmem>>, vector<8x128xf32>
    tpu.vector_store %arg24[%c0_74, %c0_75], %119 {strides = array<i32>} : memref<8x128xf32, #tpu.memory_space<vmem>>, vector<8x128xf32>,
    return
  }
  func.func @transform_0(%arg0: i32) -> (i32, i32) {
    %c0_i32 = arith.constant 0 : i32
    %c0_i32_0 = arith.constant 0 : i32
    return %arg0, %c0_i32 : i32, i32
  }
  func.func @transform_1(%arg0: i32) -> (i32, i32) {
    %c0_i32 = arith.constant 0 : i32
    %c0_i32_0 = arith.constant 0 : i32
    %c0_i32_1 = arith.constant 0 : i32
    return %c0_i32, %c0_i32_0 : i32, i32
  }
  func.func @transform_2(%arg0: i32) -> (i32, i32) {
    %c0_i32 = arith.constant 0 : i32
    %c0_i32_0 = arith.constant 0 : i32
    %c0_i32_1 = arith.constant 0 : i32
    return %c0_i32, %c0_i32_0 : i32, i32
  }
  func.func @transform_3(%arg0: i32) -> (i32, i32) {
    %c0_i32 = arith.constant 0 : i32
    %c0_i32_0 = arith.constant 0 : i32
    %c0_i32_1 = arith.constant 0 : i32
    return %c0_i32, %c0_i32_0 : i32, i32
  }
  func.func @transform_4(%arg0: i32) -> (i32, i32) {
    %c0_i32 = arith.constant 0 : i32
    %c0_i32_0 = arith.constant 0 : i32
    %c0_i32_1 = arith.constant 0 : i32
    return %c0_i32, %c0_i32_0 : i32, i32
  }
  func.func @transform_5(%arg0: i32) -> (i32, i32) {
    %c0_i32 = arith.constant 0 : i32
    %c0_i32_0 = arith.constant 0 : i32
    %c0_i32_1 = arith.constant 0 : i32
    return %c0_i32, %c0_i32_0 : i32, i32
  }
  func.func @transform_6(%arg0: i32) -> (i32, i32) {
    %c0_i32 = arith.constant 0 : i32
    %c0_i32_0 = arith.constant 0 : i32
    %c0_i32_1 = arith.constant 0 : i32
    return %c0_i32, %c0_i32_0 : i32, i32
  }
  func.func @transform_7(%arg0: i32) -> (i32, i32) {
    %c0_i32 = arith.constant 0 : i32
    %c0_i32_0 = arith.constant 0 : i32
    %c0_i32_1 = arith.constant 0 : i32
    return %c0_i32, %c0_i32_0 : i32, i32
  }
  func.func @transform_8(%arg0: i32) -> (i32, i32) {
    %c0_i32 = arith.constant 0 : i32
    %c0_i32_0 = arith.constant 0 : i32
    %c0_i32_1 = arith.constant 0 : i32
    return %c0_i32, %c0_i32_0 : i32, i32
  }
  func.func @transform_9(%arg0: i32) -> (i32, i32) {
    %c0_i32 = arith.constant 0 : i32
    %c0_i32_0 = arith.constant 0 : i32
    %c0_i32_1 = arith.constant 0 : i32
    return %c0_i32, %c0_i32_0 : i32, i32
  }
  func.func @transform_10(%arg0: i32) -> (i32, i32) {
    %c0_i32 = arith.constant 0 : i32
    %c0_i32_0 = arith.constant 0 : i32
    %c0_i32_1 = arith.constant 0 : i32
    return %c0_i32, %c0_i32_0 : i32, i32
  }
  func.func @transform_11(%arg0: i32) -> (i32, i32) {
    %c0_i32 = arith.constant 0 : i32
    %c0_i32_0 = arith.constant 0 : i32
    %c0_i32_1 = arith.constant 0 : i32
    return %c0_i32, %c0_i32_0 : i32, i32
  }
  func.func @transform_12(%arg0: i32) -> (i32, i32) {
    %c0_i32 = arith.constant 0 : i32
    %c0_i32_0 = arith.constant 0 : i32
    %c0_i32_1 = arith.constant 0 : i32
    return %c0_i32, %c0_i32_0 : i32, i32
  }
  func.func @transform_13(%arg0: i32) -> (i32, i32) {
    %c0_i32 = arith.constant 0 : i32
    %c0_i32_0 = arith.constant 0 : i32
    %c0_i32_1 = arith.constant 0 : i32
    return %c0_i32, %c0_i32_0 : i32, i32
  }
  func.func @transform_14(%arg0: i32) -> (i32, i32) {
    %c0_i32 = arith.constant 0 : i32
    %c0_i32_0 = arith.constant 0 : i32
    %c0_i32_1 = arith.constant 0 : i32
    return %c0_i32, %c0_i32_0 : i32, i32
  }
  func.func @transform_15(%arg0: i32) -> (i32, i32) {
    %c0_i32 = arith.constant 0 : i32
    %c0_i32_0 = arith.constant 0 : i32
    %c0_i32_1 = arith.constant 0 : i32
    return %c0_i32, %c0_i32_0 : i32, i32
  }
  func.func @transform_16(%arg0: i32) -> (i32, i32) {
    %c0_i32 = arith.constant 0 : i32
    %c0_i32_0 = arith.constant 0 : i32
    %c0_i32_1 = arith.constant 0 : i32
    return %c0_i32, %c0_i32_0 : i32, i32
  }
  func.func @transform_17(%arg0: i32) -> (i32, i32) {
    %c0_i32 = arith.constant 0 : i32
    %c0_i32_0 = arith.constant 0 : i32
    %c0_i32_1 = arith.constant 0 : i32
    return %c0_i32, %c0_i32_0 : i32, i32
  }
  func.func @transform_18(%arg0: i32) -> (i32, i32) {
    %c0_i32 = arith.constant 0 : i32
    %c0_i32_0 = arith.constant 0 : i32
    %c0_i32_1 = arith.constant 0 : i32
    return %c0_i32, %c0_i32_0 : i32, i32
  }
  func.func @transform_19(%arg0: i32) -> (i32, i32) {
    %c0_i32 = arith.constant 0 : i32
    %c0_i32_0 = arith.constant 0 : i32
    %c0_i32_1 = arith.constant 0 : i32
    return %c0_i32, %c0_i32_0 : i32, i32
  }
  func.func @transform_20(%arg0: i32) -> (i32, i32) {
    %c0_i32 = arith.constant 0 : i32
    %c0_i32_0 = arith.constant 0 : i32
    %c0_i32_1 = arith.constant 0 : i32
    return %c0_i32, %c0_i32_0 : i32, i32
  }
  func.func @transform_21(%arg0: i32) -> (i32, i32) {
    %c0_i32 = arith.constant 0 : i32
    %c0_i32_0 = arith.constant 0 : i32
    %c0_i32_1 = arith.constant 0 : i32
    return %c0_i32, %c0_i32_0 : i32, i32
  }
  func.func @transform_22(%arg0: i32) -> (i32, i32) {
    %c0_i32 = arith.constant 0 : i32
    %c0_i32_0 = arith.constant 0 : i32
    %c0_i32_1 = arith.constant 0 : i32
    return %c0_i32, %c0_i32_0 : i32, i32
  }
  func.func @transform_23(%arg0: i32) -> (i32, i32) {
    %c0_i32 = arith.constant 0 : i32
    %c0_i32_0 = arith.constant 0 : i32
    return %arg0, %c0_i32 : i32, i32
  }
}

</mosaic_0001>

<bundles_post_ra>
// kernel: tpu_custom_call.1
= control target key start
LH: loop header
LB: loop body
LE: loop exit
PB: predicated region body
PF: predicated region fallthrough
CT: control target
= control target key end

     0   :  { %s3187_s0 = inlined_call_operand.hbm [shape: bf16[8,128], index: 0, kind: input, shape index: {}]   ;;  %s3188_s1 = inlined_call_operand.hbm [shape: bf16[128,128], index: 1, kind: input, shape index: {}]   ;;  %s3189_s2 = inlined_call_operand.hbm [shape: f32[1,128], index: 2, kind: input, shape index: {}]   ;;  %s3190_s3 = inlined_call_operand.hbm [shape: bf16[128,128], index: 3, kind: input, shape index: {}]   ;;  %s3191_s4 = inlined_call_operand.hbm [shape: f32[1,128], index: 4, kind: input, shape index: {}]   ;;  %s3192_s5 = inlined_call_operand.hbm [shape: bf16[128,128], index: 5, kind: input, shape index: {}]   ;;  %s3193_s6 = inlined_call_operand.hbm [shape: f32[1,128], index: 6, kind: input, shape index: {}]   ;;  %s3194_s7 = inlined_call_operand.hbm [shape: bf16[128,128], index: 7, kind: input, shape index: {}]   ;;  %s3195_s8 = inlined_call_operand.hbm [shape: f32[1,128], index: 8, kind: input, shape index: {}]   ;;  %s3196_s9 = inlined_call_operand.hbm [shape: bf16[128,128], index: 9, kind: input, shape index: {}]   ;;  %s3197_s10 = inlined_call_operand.hbm [shape: f32[1,128], index: 10, kind: input, shape index: {}]   ;;  %s3198_s11 = inlined_call_operand.hbm [shape: bf16[128,128], index: 11, kind: input, shape index: {}]   ;;  %s3199_s12 = inlined_call_operand.hbm [shape: f32[1,128], index: 12, kind: input, shape index: {}]   ;;  %s3200_s13 = inlined_call_operand.hbm [shape: bf16[128,128], index: 13, kind: input, shape index: {}]   ;;  %s3201_s14 = inlined_call_operand.hbm [shape: f32[1,128], index: 14, kind: input, shape index: {}]   ;;  %s3202_s15 = inlined_call_operand.hbm [shape: bf16[128,128], index: 15, kind: input, shape index: {}]   ;;  %s3203_s16 = inlined_call_operand.hbm [shape: f32[1,128], index: 16, kind: input, shape index: {}]   ;;  %s3204_s17 = inlined_call_operand.vmem [shape: bf16[128,128], index: 17, kind: input, shape index: {}]   ;;  %s3205_s18 = inlined_call_operand.vmem [shape: f32[1,128], index: 18, kind: input, shape index: {}]   ;;  %s3206_s19 = inlined_call_operand.hbm [shape: bf16[128,128], index: 19, kind: input, shape index: {}]   ;;  %s3207_s20 = inlined_call_operand.vmem [shape: f32[1,128], index: 20, kind: input, shape index: {}]   ;;  %s3208_s21 = inlined_call_operand.hbm [shape: bf16[128,128], index: 21, kind: input, shape index: {}]   ;;  %s3209_s22 = inlined_call_operand.vmem [shape: f32[1,128], index: 22, kind: input, shape index: {}]   ;;  %s3210_s23 = inlined_call_operand.hbm [shape: f32[8,128], index: 23, kind: output, shape index: {}]  }
   0x1   :  { %3220 = sst [smem:[#allocation44_spill]] %s3187_s0 }
   0x2   :  { %3221 = sst [smem:[#allocation45_spill]] %s3188_s1 }
   0x3   :  { %3222 = sst [smem:[#allocation46_spill]] %s3189_s2 }
   0x4   :  { %3223 = sst [smem:[#allocation47_spill]] %s3190_s3 }
   0x5   :  { %3224 = sst [smem:[#allocation48_spill]] %s3191_s4 }
   0x6   :  { %3225 = sst [smem:[#allocation49_spill]] %s3192_s5 }
   0x7   :  { %3226 = sst [smem:[#allocation50_spill]] %s3193_s6 }
   0x8   :  { %3227 = sst [smem:[#allocation51_spill]] %s3194_s7 }
   0x9   :  { %3228 = sst [smem:[#allocation52_spill]] %s3207_s20 }
   0xa   :  { %3229 = sst [smem:[#allocation53_spill]] %s3209_s22 }
   0xb   :  { %3230 = sst [smem:[#allocation54_spill]] %s3210_s23 }
   0xc   :  { %28 = vsyncpa [#allocation3], 0 }
   0xd   :  { %29 = vsyncpa [#allocation6], 0 }
   0xe   :  { %30 = vsyncpa [#allocation9], 0 }
   0xf   :  { %31 = vsyncpa [#allocation12], 0 }
  0x10   :  { %32 = vsyncpa [#allocation15], 0 }
  0x11   :  { %33 = vsyncpa [#allocation18], 0 }
  0x12   :  { %34 = vsyncpa [#allocation21], 0 }
  0x13   :  { %35 = vsyncpa [#allocation24], 0 }
  0x14   :  { %36 = vsyncpa [#allocation27], 0 }
  0x15   :  { %37 = vsyncpa [#allocation30], 0 }
  0x16   :  { %38 = vsyncpa [#allocation4], 0  ;;  %s2621_s4 = smov [#allocation5]   ;;  %s3231_s5 = sld [smem:[#allocation45_spill]] }
  0x17   :  { %s54_s30 = sshll.u32 %s2621_s4, 4  ;;  %s55_s30 = int_to_ptr.vmem [resolvable:$true] %s54_s30 }
  0x1c   :  { %s2159_s1 = scalar_lea.hbm %s3231_s5, 1024 }
  0x1d   :  { %p2160_p0 = scmp.ne.s32.totalorder %s3231_s5, %s2159_s1  ;;  %p2163_p1 = scmp.lt.u32.totalorder %s2159_s1, %s3231_s5 }
  0x1f   :  { %p2165_p2 = pnand %p2163_p1, %p2160_p0 }
  0x21   :  { %2168 = shalt.err (!%p2165_p2)
}
  0x22   :  { %s2169_s7 = scalar_lea.vmem %s55_s30, 1024  ;;  %p2174_p4 = scmp.lt.s32.totalorder %s55_s30, %s55_s30 }
  0x23   :  { %p2170_p3 = scmp.ne.s32.totalorder %s55_s30, %s2169_s7  ;;  %p2175_p5 = scmp.lt.s32.totalorder %s2169_s7, %s2169_s7 }
  0x25   :  { %p2176_p6 = por %p2175_p5, %p2174_p4 }
  0x27   :  { %p2177_p7 = pnand %p2176_p6, %p2170_p3 }
  0x29   :  { %2180 = shalt.err (!%p2177_p7)
}
  0x2a   :  { %s2622_s28 = smov 64   ;;  %s2623_s29 = smov 4  }
  0x2b   :  { %60 = dma.hbm_to_vmem [thread:$0]  %s3231_s5, 1024, %s55_s30, [#allocation6], %s2622_s28, %s2622_s28, %s2623_s29  }
  0x2c   :  { %s2624_s4 = smov [#allocation8]   ;;  %s2625_s25 = smov [#allocation11]  }
  0x2d   :  { %s76_s24 = sshll.u32 %s2624_s4, 4  ;;  %s98_s1 = sshll.u32 %s2625_s25, 4  ;;  %s77_s24 = int_to_ptr.vmem [resolvable:$true] %s76_s24  ;;  %s99_s1 = int_to_ptr.vmem [resolvable:$true] %s98_s1 }
  0x2e   :  { %s3232_s6 = sld [smem:[#allocation47_spill]] }
  0x34   :  { %s2181_s27 = scalar_lea.hbm %s3232_s6, 1024 }
  0x35   :  { %p2182_p8 = scmp.ne.s32.totalorder %s3232_s6, %s2181_s27  ;;  %p2185_p9 = scmp.lt.u32.totalorder %s2181_s27, %s3232_s6 }
  0x37   :  { %p2187_p10 = pnand %p2185_p9, %p2182_p8 }
  0x39   :  { %2190 = shalt.err (!%p2187_p10)
}
  0x3a   :  { %s2191_s30 = scalar_lea.vmem %s77_s24, 1024  ;;  %p2196_p12 = scmp.lt.s32.totalorder %s77_s24, %s77_s24 }
  0x3b   :  { %p2192_p11 = scmp.ne.s32.totalorder %s77_s24, %s2191_s30  ;;  %p2197_p13 = scmp.lt.s32.totalorder %s2191_s30, %s2191_s30 }
  0x3d   :  { %p2198_p0 = por %p2197_p13, %p2196_p12 }
  0x3f   :  { %p2199_p1 = pnand %p2198_p0, %p2192_p11 }
  0x41   :  { %2202 = shalt.err (!%p2199_p1)
}
  0x42   :  { %82 = dma.hbm_to_vmem [thread:$0]  %s3232_s6, 1024, %s77_s24, [#allocation9], %s2622_s28, %s2622_s28, %s2623_s29  }
  0x43   :  { %s3233_s22 = sld [smem:[#allocation49_spill]] }
  0x49   :  { %s2203_s0 = scalar_lea.hbm %s3233_s22, 1024 }
  0x4a   :  { %p2204_p2 = scmp.ne.s32.totalorder %s3233_s22, %s2203_s0  ;;  %p2207_p3 = scmp.lt.u32.totalorder %s2203_s0, %s3233_s22 }
  0x4c   :  { %p2209_p4 = pnand %p2207_p3, %p2204_p2 }
  0x4e   :  { %2212 = shalt.err (!%p2209_p4)
}
  0x4f   :  { %s2213_s27 = scalar_lea.vmem %s99_s1, 1024  ;;  %p2218_p6 = scmp.lt.s32.totalorder %s99_s1, %s99_s1 }
  0x50   :  { %p2214_p5 = scmp.ne.s32.totalorder %s99_s1, %s2213_s27  ;;  %p2219_p7 = scmp.lt.s32.totalorder %s2213_s27, %s2213_s27 }
  0x52   :  { %p2220_p8 = por %p2219_p7, %p2218_p6 }
  0x54   :  { %p2221_p9 = pnand %p2220_p8, %p2214_p5 }
  0x56   :  { %2224 = shalt.err (!%p2221_p9)
}
  0x57   :  { %104 = dma.hbm_to_vmem [thread:$0]  %s3233_s22, 1024, %s99_s1, [#allocation12], %s2622_s28, %s2622_s28, %s2623_s29  }
  0x58   :  { %s2626_s7 = smov [#allocation14]   ;;  %s2627_s5 = smov [#allocation17]  }
  0x59   :  { %s120_s30 = sshll.u32 %s2626_s7, 4  ;;  %s142_s3 = sshll.u32 %s2627_s5, 4  ;;  %s121_s30 = int_to_ptr.vmem [resolvable:$true] %s120_s30  ;;  %s143_s3 = int_to_ptr.vmem [resolvable:$true] %s142_s3 }
  0x5a   :  { %s3234_s0 = sld [smem:[#allocation51_spill]] }
  0x60   :  { %s2225_s4 = scalar_lea.hbm %s3234_s0, 1024 }
  0x61   :  { %p2226_p10 = scmp.ne.s32.totalorder %s3234_s0, %s2225_s4  ;;  %p2229_p11 = scmp.lt.u32.totalorder %s2225_s4, %s3234_s0 }
  0x63   :  { %p2231_p12 = pnand %p2229_p11, %p2226_p10 }
  0x65   :  { %2234 = shalt.err (!%p2231_p12)
}
  0x66   :  { %s2235_s1 = scalar_lea.vmem %s121_s30, 1024  ;;  %p2240_p0 = scmp.lt.s32.totalorder %s121_s30, %s121_s30 }
  0x67   :  { %p2236_p13 = scmp.ne.s32.totalorder %s121_s30, %s2235_s1  ;;  %p2241_p1 = scmp.lt.s32.totalorder %s2235_s1, %s2235_s1 }
  0x69   :  { %p2242_p2 = por %p2241_p1, %p2240_p0 }
  0x6b   :  { %p2243_p3 = pnand %p2242_p2, %p2236_p13 }
  0x6d   :  { %2246 = shalt.err (!%p2243_p3)
}
  0x6e   :  { %126 = dma.hbm_to_vmem [thread:$0]  %s3234_s0, 1024, %s121_s30, [#allocation15], %s2622_s28, %s2622_s28, %s2623_s29  }
  0x6f   :  { %s2247_s5 = scalar_lea.hbm %s3196_s9, 1024 }
  0x70   :  { %p2248_p4 = scmp.ne.s32.totalorder %s3196_s9, %s2247_s5  ;;  %p2251_p5 = scmp.lt.u32.totalorder %s2247_s5, %s3196_s9 }
  0x72   :  { %p2253_p6 = pnand %p2251_p5, %p2248_p4 }
  0x74   :  { %2256 = shalt.err (!%p2253_p6)
}
  0x75   :  { %s2257_s26 = scalar_lea.vmem %s143_s3, 1024  ;;  %p2262_p8 = scmp.lt.s32.totalorder %s143_s3, %s143_s3 }
  0x76   :  { %p2258_p7 = scmp.ne.s32.totalorder %s143_s3, %s2257_s26  ;;  %p2263_p9 = scmp.lt.s32.totalorder %s2257_s26, %s2257_s26 }
  0x78   :  { %p2264_p10 = por %p2263_p9, %p2262_p8 }
  0x7a   :  { %p2265_p11 = pnand %p2264_p10, %p2258_p7 }
  0x7c   :  { %2268 = shalt.err (!%p2265_p11)
}
  0x7d   :  { %148 = dma.hbm_to_vmem [thread:$0]  %s3196_s9, 1024, %s143_s3, [#allocation18], %s2622_s28, %s2622_s28, %s2623_s29  }
  0x7e   :  { %s2628_s2 = smov [#allocation20]   ;;  %s2629_s1 = smov [#allocation23]  }
  0x7f   :  { %s164_s27 = sshll.u32 %s2628_s2, 4  ;;  %s186_s22 = sshll.u32 %s2629_s1, 4  ;;  %s165_s27 = int_to_ptr.vmem [resolvable:$true] %s164_s27  ;;  %s187_s22 = int_to_ptr.vmem [resolvable:$true] %s186_s22 }
  0x80   :  { %s2269_s7 = scalar_lea.hbm %s3198_s11, 1024 }
  0x81   :  { %p2270_p12 = scmp.ne.s32.totalorder %s3198_s11, %s2269_s7  ;;  %p2273_p13 = scmp.lt.u32.totalorder %s2269_s7, %s3198_s11 }
  0x83   :  { %p2275_p0 = pnand %p2273_p13, %p2270_p12 }
  0x85   :  { %2278 = shalt.err (!%p2275_p0)
}
  0x86   :  { %s2279_s9 = scalar_lea.vmem %s165_s27, 1024  ;;  %p2284_p2 = scmp.lt.s32.totalorder %s165_s27, %s165_s27 }
  0x87   :  { %p2280_p1 = scmp.ne.s32.totalorder %s165_s27, %s2279_s9  ;;  %p2285_p3 = scmp.lt.s32.totalorder %s2279_s9, %s2279_s9 }
  0x89   :  { %p2286_p4 = por %p2285_p3, %p2284_p2 }
  0x8b   :  { %p2287_p5 = pnand %p2286_p4, %p2280_p1 }
  0x8d   :  { %2290 = shalt.err (!%p2287_p5)
}
  0x8e   :  { %170 = dma.hbm_to_vmem [thread:$0]  %s3198_s11, 1024, %s165_s27, [#allocation21], %s2622_s28, %s2622_s28, %s2623_s29  }
  0x8f   :  { %s2291_s0 = scalar_lea.hbm %s3200_s13, 1024 }
  0x90   :  { %p2292_p6 = scmp.ne.s32.totalorder %s3200_s13, %s2291_s0  ;;  %p2295_p7 = scmp.lt.u32.totalorder %s2291_s0, %s3200_s13 }
  0x92   :  { %p2297_p8 = pnand %p2295_p7, %p2292_p6 }
  0x94   :  { %2300 = shalt.err (!%p2297_p8)
}
  0x95   :  { %s2301_s7 = scalar_lea.vmem %s187_s22, 1024  ;;  %p2306_p10 = scmp.lt.s32.totalorder %s187_s22, %s187_s22 }
  0x96   :  { %p2302_p9 = scmp.ne.s32.totalorder %s187_s22, %s2301_s7  ;;  %p2307_p11 = scmp.lt.s32.totalorder %s2301_s7, %s2301_s7 }
  0x98   :  { %p2308_p12 = por %p2307_p11, %p2306_p10 }
  0x9a   :  { %p2309_p13 = pnand %p2308_p12, %p2302_p9 }
  0x9c   :  { %2312 = shalt.err (!%p2309_p13)
}
  0x9d   :  { %192 = dma.hbm_to_vmem [thread:$0]  %s3200_s13, 1024, %s187_s22, [#allocation24], %s2622_s28, %s2622_s28, %s2623_s29  }
  0x9e   :  { %s2630_s5 = smov [#allocation26]   ;;  %s2631_s20 = smov [#allocation29]  }
  0x9f   :  { %s208_s23 = sshll.u32 %s2630_s5, 4  ;;  %s234_s4 = sshll.u32 %s2631_s20, 4  ;;  %s209_s23 = int_to_ptr.vmem [resolvable:$true] %s208_s23  ;;  %s235_s4 = int_to_ptr.vmem [resolvable:$true] %s234_s4 }
  0xa0   :  { %s2313_s25 = scalar_lea.hbm %s3202_s15, 1024 }
  0xa1   :  { %p2314_p0 = scmp.ne.s32.totalorder %s3202_s15, %s2313_s25  ;;  %p2317_p1 = scmp.lt.u32.totalorder %s2313_s25, %s3202_s15 }
  0xa3   :  { %p2319_p2 = pnand %p2317_p1, %p2314_p0 }
  0xa5   :  { %2322 = shalt.err (!%p2319_p2)
}
  0xa6   :  { %s2323_s13 = scalar_lea.vmem %s209_s23, 1024  ;;  %p2328_p4 = scmp.lt.s32.totalorder %s209_s23, %s209_s23 }
  0xa7   :  { %p2324_p3 = scmp.ne.s32.totalorder %s209_s23, %s2323_s13  ;;  %p2329_p5 = scmp.lt.s32.totalorder %s2323_s13, %s2323_s13 }
  0xa9   :  { %p2330_p6 = por %p2329_p5, %p2328_p4 }
  0xab   :  { %p2331_p7 = pnand %p2330_p6, %p2324_p3 }
  0xad   :  { %2334 = shalt.err (!%p2331_p7)
}
  0xae   :  { %214 = dma.hbm_to_vmem [thread:$0]  %s3202_s15, 1024, %s209_s23, [#allocation27], %s2622_s28, %s2622_s28, %s2623_s29  }
  0xaf   :  { %s2335_s7 = scalar_lea.hbm %s3206_s19, 1024 }
  0xb0   :  { %p2336_p8 = scmp.ne.s32.totalorder %s3206_s19, %s2335_s7  ;;  %p2339_p9 = scmp.lt.u32.totalorder %s2335_s7, %s3206_s19 }
  0xb2   :  { %p2341_p10 = pnand %p2339_p9, %p2336_p8 }
  0xb4   :  { %2344 = shalt.err (!%p2341_p10)
}
  0xb5   :  { %s2345_s9 = scalar_lea.vmem %s235_s4, 1024  ;;  %p2350_p12 = scmp.lt.s32.totalorder %s235_s4, %s235_s4 }
  0xb6   :  { %p2346_p11 = scmp.ne.s32.totalorder %s235_s4, %s2345_s9  ;;  %p2351_p13 = scmp.lt.s32.totalorder %s2345_s9, %s2345_s9 }
  0xb8   :  { %p2352_p0 = por %p2351_p13, %p2350_p12 }
  0xba   :  { %p2353_p1 = pnand %p2352_p0, %p2346_p11 }
  0xbc   :  { %2356 = shalt.err (!%p2353_p1)
}
  0xbd   :  { %240 = dma.hbm_to_vmem [thread:$0]  %s3206_s19, 1024, %s235_s4, [#allocation30], %s2622_s28, %s2622_s28, %s2623_s29  }
  0xbe   :  { %s2632_s3 = smov [#allocation2]   ;;  %s2633_s26 = smov [#allocation7]  }
  0xbf   :  { %s45_s25 = sshll.u32 %s2632_s3, 4  ;;  %s67_s30 = sshll.u32 %s2633_s26, 4  ;;  %s46_s25 = int_to_ptr.vmem [resolvable:$true] %s45_s25  ;;  %s68_s30 = int_to_ptr.vmem [resolvable:$true] %s67_s30 }
  0xc0   :  { %s3235_s13 = sld [smem:[#allocation44_spill]] }
  0xc6   :  { %s2357_s22 = scalar_lea.hbm %s3235_s13, 64 }
  0xc7   :  { %p2358_p2 = scmp.ne.s32.totalorder %s3235_s13, %s2357_s22  ;;  %p2361_p3 = scmp.lt.u32.totalorder %s2357_s22, %s3235_s13 }
  0xc9   :  { %p2363_p4 = pnand %p2361_p3, %p2358_p2 }
  0xcb   :  { %2366 = shalt.err (!%p2363_p4)
}
  0xcc   :  { %s2367_s19 = scalar_lea.vmem %s46_s25, 64  ;;  %p2372_p6 = scmp.lt.s32.totalorder %s46_s25, %s46_s25 }
  0xcd   :  { %p2368_p5 = scmp.ne.s32.totalorder %s46_s25, %s2367_s19  ;;  %p2373_p7 = scmp.lt.s32.totalorder %s2367_s19, %s2367_s19 }
  0xcf   :  { %p2374_p8 = por %p2373_p7, %p2372_p6 }
  0xd1   :  { %p2375_p9 = pnand %p2374_p8, %p2368_p5 }
  0xd3   :  { %2378 = shalt.err (!%p2375_p9)
}
  0xd4   :  { %48 = dma.hbm_to_vmem [thread:$0]  %s3235_s13, 64, %s46_s25, [#allocation3]  }
  0xd5   :  { %s3236_s20 = sld [smem:[#allocation46_spill]] }
  0xdb   :  { %s2379_s9 = scalar_lea.hbm %s3236_s20, 16 }
  0xdc   :  { %p2380_p10 = scmp.ne.s32.totalorder %s3236_s20, %s2379_s9  ;;  %p2383_p11 = scmp.lt.u32.totalorder %s2379_s9, %s3236_s20 }
  0xde   :  { %p2385_p12 = pnand %p2383_p11, %p2380_p10 }
  0xe0   :  { %2388 = shalt.err (!%p2385_p12)
}
  0xe1   :  { %s2389_s0 = scalar_lea.vmem %s68_s30, 16  ;;  %s2393_s2 = scalar_lea.vmem %s68_s30, 32 }
  0xe2   :  { %p2390_p13 = scmp.ne.s32.totalorder %s68_s30, %s2389_s0  ;;  %p2394_p0 = scmp.lt.s32.totalorder %s68_s30, %s68_s30 }
  0xe3   :  { %p2395_p1 = scmp.lt.s32.totalorder %s2393_s2, %s2389_s0 }
  0xe5   :  { %p2396_p2 = por %p2395_p1, %p2394_p0 }
  0xe7   :  { %p2397_p3 = pnand %p2396_p2, %p2390_p13 }
  0xe9   :  { %2400 = shalt.err (!%p2397_p3)
}
  0xea   :  { %70 = dma.hbm_to_vmem [thread:$0]  %s3236_s20, 16, %s68_s30, [#allocation6]  }
  0xeb   :  { %s2634_s22 = smov [#allocation10]   ;;  %s2635_s24 = smov [#allocation13]  }
  0xec   :  { %s89_s1 = sshll.u32 %s2634_s22, 4  ;;  %s111_s6 = sshll.u32 %s2635_s24, 4  ;;  %s90_s1 = int_to_ptr.vmem [resolvable:$true] %s89_s1  ;;  %s112_s6 = int_to_ptr.vmem [resolvable:$true] %s111_s6 }
  0xed   :  { %s3237_s4 = sld [smem:[#allocation48_spill]] }
  0xf3   :  { %s2401_s11 = scalar_lea.hbm %s3237_s4, 16 }
  0xf4   :  { %p2402_p4 = scmp.ne.s32.totalorder %s3237_s4, %s2401_s11  ;;  %p2405_p5 = scmp.lt.u32.totalorder %s2401_s11, %s3237_s4 }
  0xf6   :  { %p2407_p6 = pnand %p2405_p5, %p2402_p4 }
  0xf8   :  { %2410 = shalt.err (!%p2407_p6)
}
  0xf9   :  { %s2411_s30 = scalar_lea.vmem %s90_s1, 16  ;;  %s2415_s20 = scalar_lea.vmem %s90_s1, 32 }
  0xfa   :  { %p2412_p7 = scmp.ne.s32.totalorder %s90_s1, %s2411_s30  ;;  %p2416_p8 = scmp.lt.s32.totalorder %s90_s1, %s90_s1 }
  0xfb   :  { %p2417_p9 = scmp.lt.s32.totalorder %s2415_s20, %s2411_s30 }
  0xfd   :  { %p2418_p10 = por %p2417_p9, %p2416_p8 }
  0xff   :  { %p2419_p11 = pnand %p2418_p10, %p2412_p7 }
 0x101   :  { %2422 = shalt.err (!%p2419_p11)
}
 0x102   :  { %92 = dma.hbm_to_vmem [thread:$0]  %s3237_s4, 16, %s90_s1, [#allocation9]  }
 0x103   :  { %s3238_s2 = sld [smem:[#allocation50_spill]] }
 0x109   :  { %s2423_s25 = scalar_lea.hbm %s3238_s2, 16 }
 0x10a   :  { %p2424_p12 = scmp.ne.s32.totalorder %s3238_s2, %s2423_s25  ;;  %p2427_p13 = scmp.lt.u32.totalorder %s2423_s25, %s3238_s2 }
 0x10c   :  { %p2429_p0 = pnand %p2427_p13, %p2424_p12 }
 0x10e   :  { %2432 = shalt.err (!%p2429_p0)
}
 0x10f   :  { %s2433_s19 = scalar_lea.vmem %s112_s6, 16  ;;  %s2437_s11 = scalar_lea.vmem %s112_s6, 32 }
 0x110   :  { %p2434_p1 = scmp.ne.s32.totalorder %s112_s6, %s2433_s19  ;;  %p2438_p2 = scmp.lt.s32.totalorder %s112_s6, %s112_s6 }
 0x111   :  { %p2439_p3 = scmp.lt.s32.totalorder %s2437_s11, %s2433_s19 }
 0x113   :  { %p2440_p4 = por %p2439_p3, %p2438_p2 }
 0x115   :  { %p2441_p5 = pnand %p2440_p4, %p2434_p1 }
 0x117   :  { %2444 = shalt.err (!%p2441_p5)
}
 0x118   :  { %114 = dma.hbm_to_vmem [thread:$0]  %s3238_s2, 16, %s112_s6, [#allocation12]  }
 0x119   :  { %s2636_s27 = smov [#allocation16]   ;;  %s2637_s9 = smov [#allocation19]  }
 0x11a   :  { %s133_s5 = sshll.u32 %s2636_s27, 4  ;;  %s155_s15 = sshll.u32 %s2637_s9, 4  ;;  %s134_s5 = int_to_ptr.vmem [resolvable:$true] %s133_s5  ;;  %s156_s15 = int_to_ptr.vmem [resolvable:$true] %s155_s15 }
 0x11b   :  { %s2445_s23 = scalar_lea.hbm %s3195_s8, 16 }
 0x11c   :  { %p2446_p6 = scmp.ne.s32.totalorder %s3195_s8, %s2445_s23  ;;  %p2449_p7 = scmp.lt.u32.totalorder %s2445_s23, %s3195_s8 }
 0x11e   :  { %p2451_p8 = pnand %p2449_p7, %p2446_p6 }
 0x120   :  { %2454 = shalt.err (!%p2451_p8)
}
 0x121   :  { %s2455_s6 = scalar_lea.vmem %s134_s5, 16  ;;  %s2459_s2 = scalar_lea.vmem %s134_s5, 32 }
 0x122   :  { %p2456_p9 = scmp.ne.s32.totalorder %s134_s5, %s2455_s6  ;;  %p2460_p10 = scmp.lt.s32.totalorder %s134_s5, %s134_s5 }
 0x123   :  { %p2461_p11 = scmp.lt.s32.totalorder %s2459_s2, %s2455_s6 }
 0x125   :  { %p2462_p12 = por %p2461_p11, %p2460_p10 }
 0x127   :  { %p2463_p13 = pnand %p2462_p12, %p2456_p9 }
 0x129   :  { %2466 = shalt.err (!%p2463_p13)
}
 0x12a   :  { %136 = dma.hbm_to_vmem [thread:$0]  %s3195_s8, 16, %s134_s5, [#allocation15]  }
 0x12b   :  { %s2467_s19 = scalar_lea.hbm %s3197_s10, 16 }
 0x12c   :  { %p2468_p0 = scmp.ne.s32.totalorder %s3197_s10, %s2467_s19  ;;  %p2471_p1 = scmp.lt.u32.totalorder %s2467_s19, %s3197_s10 }
 0x12e   :  { %p2473_p2 = pnand %p2471_p1, %p2468_p0 }
 0x130   :  { %2476 = shalt.err (!%p2473_p2)
}
 0x131   :  { %s2477_s9 = scalar_lea.vmem %s156_s15, 16  ;;  %s2481_s30 = scalar_lea.vmem %s156_s15, 32 }
 0x132   :  { %p2478_p3 = scmp.ne.s32.totalorder %s156_s15, %s2477_s9  ;;  %p2482_p4 = scmp.lt.s32.totalorder %s156_s15, %s156_s15 }
 0x133   :  { %p2483_p5 = scmp.lt.s32.totalorder %s2481_s30, %s2477_s9 }
 0x135   :  { %p2484_p6 = por %p2483_p5, %p2482_p4 }
 0x137   :  { %p2485_p7 = pnand %p2484_p6, %p2478_p3 }
 0x139   :  { %2488 = shalt.err (!%p2485_p7)
}
 0x13a   :  { %158 = dma.hbm_to_vmem [thread:$0]  %s3197_s10, 16, %s156_s15, [#allocation18]  }
 0x13b   :  { %s2638_s20 = smov [#allocation22]   ;;  %s2639_s3 = smov [#allocation25]  }
 0x13c   :  { %s177_s23 = sshll.u32 %s2638_s20, 4  ;;  %s199_s26 = sshll.u32 %s2639_s3, 4  ;;  %s178_s23 = int_to_ptr.vmem [resolvable:$true] %s177_s23  ;;  %s200_s26 = int_to_ptr.vmem [resolvable:$true] %s199_s26 }
 0x13d   :  { %s2489_s6 = scalar_lea.hbm %s3199_s12, 16 }
 0x13e   :  { %p2490_p8 = scmp.ne.s32.totalorder %s3199_s12, %s2489_s6  ;;  %p2493_p9 = scmp.lt.u32.totalorder %s2489_s6, %s3199_s12 }
 0x140   :  { %p2495_p10 = pnand %p2493_p9, %p2490_p8 }
 0x142   :  { %2498 = shalt.err (!%p2495_p10)
}
 0x143   :  { %s2499_s10 = scalar_lea.vmem %s178_s23, 16  ;;  %s2503_s15 = scalar_lea.vmem %s178_s23, 32 }
 0x144   :  { %p2500_p11 = scmp.ne.s32.totalorder %s178_s23, %s2499_s10  ;;  %p2504_p12 = scmp.lt.s32.totalorder %s178_s23, %s178_s23 }
 0x145   :  { %p2505_p13 = scmp.lt.s32.totalorder %s2503_s15, %s2499_s10 }
 0x147   :  { %p2506_p0 = por %p2505_p13, %p2504_p12 }
 0x149   :  { %p2507_p1 = pnand %p2506_p0, %p2500_p11 }
 0x14b   :  { %2510 = shalt.err (!%p2507_p1)
}
 0x14c   :  { %180 = dma.hbm_to_vmem [thread:$0]  %s3199_s12, 16, %s178_s23, [#allocation21]  }
 0x14d   :  { %s2511_s4 = scalar_lea.hbm %s3201_s14, 16 }
 0x14e   :  { %p2512_p2 = scmp.ne.s32.totalorder %s3201_s14, %s2511_s4  ;;  %p2515_p3 = scmp.lt.u32.totalorder %s2511_s4, %s3201_s14 }
 0x150   :  { %p2517_p4 = pnand %p2515_p3, %p2512_p2 }
 0x152   :  { %2520 = shalt.err (!%p2517_p4)
}
 0x153   :  { %s2521_s5 = scalar_lea.vmem %s200_s26, 16  ;;  %s2525_s20 = scalar_lea.vmem %s200_s26, 32 }
 0x154   :  { %p2522_p5 = scmp.ne.s32.totalorder %s200_s26, %s2521_s5  ;;  %p2526_p6 = scmp.lt.s32.totalorder %s200_s26, %s200_s26 }
 0x155   :  { %p2527_p7 = scmp.lt.s32.totalorder %s2525_s20, %s2521_s5 }
 0x157   :  { %p2528_p8 = por %p2527_p7, %p2526_p6 }
 0x159   :  { %p2529_p9 = pnand %p2528_p8, %p2522_p5 }
 0x15b   :  { %2532 = shalt.err (!%p2529_p9)
}
 0x15c   :  { %202 = dma.hbm_to_vmem [thread:$0]  %s3201_s14, 16, %s200_s26, [#allocation24]  }
 0x15d   :  { %s2640_s3 = smov [#allocation28]   ;;  %s2641_s25 = smov [#allocation31]  }
 0x15e   :  { %s221_s0 = sshll.u32 %s2640_s3, 4  ;;  %s248_s6 = sshll.u32 %s2641_s25, 4  ;;  %s222_s0 = int_to_ptr.vmem [resolvable:$true] %s221_s0  ;;  %s249_s6 = int_to_ptr.vmem [resolvable:$true] %s248_s6 }
 0x15f   :  { %s2533_s22 = scalar_lea.hbm %s3203_s16, 16 }
 0x160   :  { %p2534_p10 = scmp.ne.s32.totalorder %s3203_s16, %s2533_s22  ;;  %p2537_p11 = scmp.lt.u32.totalorder %s2533_s22, %s3203_s16 }
 0x162   :  { %p2539_p12 = pnand %p2537_p11, %p2534_p10 }
 0x164   :  { %2542 = shalt.err (!%p2539_p12)
}
 0x165   :  { %s2543_s14 = scalar_lea.vmem %s222_s0, 16  ;;  %s2547_s26 = scalar_lea.vmem %s222_s0, 32 }
 0x166   :  { %p2544_p13 = scmp.ne.s32.totalorder %s222_s0, %s2543_s14  ;;  %p2548_p0 = scmp.lt.s32.totalorder %s222_s0, %s222_s0 }
 0x167   :  { %p2549_p1 = scmp.lt.s32.totalorder %s2547_s26, %s2543_s14 }
 0x169   :  { %p2550_p2 = por %p2549_p1, %p2548_p0 }
 0x16b   :  { %p2551_p3 = pnand %p2550_p2, %p2544_p13 }
 0x16d   :  { %2554 = shalt.err (!%p2551_p3)
}
 0x16e   :  { %224 = dma.hbm_to_vmem [thread:$0]  %s3203_s16, 16, %s222_s0, [#allocation27]  }
 0x16f   :  { %s2555_s27 = scalar_lea.hbm %s3208_s21, 1024 }
 0x170   :  { %p2556_p4 = scmp.ne.s32.totalorder %s3208_s21, %s2555_s27  ;;  %p2559_p5 = scmp.lt.u32.totalorder %s2555_s27, %s3208_s21 }
 0x172   :  { %p2561_p6 = pnand %p2559_p5, %p2556_p4 }
 0x174   :  { %2564 = shalt.err (!%p2561_p6)
}
 0x175   :  { %s2565_s20 = scalar_lea.vmem %s249_s6, 1024  ;;  %p2570_p8 = scmp.lt.s32.totalorder %s249_s6, %s249_s6 }
 0x176   :  { %p2566_p7 = scmp.ne.s32.totalorder %s249_s6, %s2565_s20  ;;  %p2571_p9 = scmp.lt.s32.totalorder %s2565_s20, %s2565_s20 }
 0x178   :  { %p2572_p10 = por %p2571_p9, %p2570_p8 }
 0x17a   :  { %p2573_p11 = pnand %p2572_p10, %p2566_p7 }
 0x17c   :  { %2576 = shalt.err (!%p2573_p11)
}
 0x17d   :  { %254 = dma.hbm_to_vmem [thread:$0]  %s3208_s21, 1024, %s249_s6, [#allocation30], %s2622_s28, %s2622_s28, %s2623_s29  }
 0x17e   :  { %2599 = dma.done.wait [#allocation3], 64  }
 0x17f   :  { %2600 = vsyncadd [#allocation3], 4294967232 }
 0x180   :  { %2601 = dma.done.wait [#allocation6], 1040  }
 0x181   :  { %2602 = vsyncadd [#allocation6], 4294966256 }
 0x182   :  { %2603 = dma.done.wait [#allocation9], 1040  }
 0x183   :  { %2604 = vsyncadd [#allocation9], 4294966256 }
 0x184   :  { %2605 = dma.done.wait [#allocation12], 1040  }
 0x185   :  { %2606 = vsyncadd [#allocation12], 4294966256 }
 0x186   :  { %2607 = dma.done.wait [#allocation15], 1040  }
 0x187   :  { %2608 = vsyncadd [#allocation15], 4294966256 }
 0x188   :  { %2609 = dma.done.wait [#allocation18], 1040  }
 0x189   :  { %2610 = vsyncadd [#allocation18], 4294966256 }
 0x18a   :  { %2611 = dma.done.wait [#allocation21], 1040  }
 0x18b   :  { %2612 = vsyncadd [#allocation21], 4294966256 }
 0x18c   :  { %2613 = dma.done.wait [#allocation24], 1040  }
 0x18d   :  { %2614 = vsyncadd [#allocation24], 4294966256 }
 0x18e   :  { %2615 = dma.done.wait [#allocation27], 1040  }
 0x18f   :  { %2616 = vsyncadd [#allocation27], 4294966256 }
 0x190   :  { %2617 = dma.done.wait [#allocation30], 2048  }
 0x191   :  { %2618 = vsyncadd [#allocation30], 4294965248  ;;  %v2642_v0 = vmov 0.0   ;;  %vm2643_vm0 = vmmov 0   ;;  %v2049_v1 = vld [vmem:[#allocation5] sm:$0xff]   ;;  %v2050_v2 = vld [vmem:[#allocation5 + $0x8] sm:$0xff]  }
 0x192   :  { %1805 = vmatprep.subr.bf16.mxu0 %v2642_v0  ;;  %1821 = vmatprep.mubr.msk.bf16.mxu0 %vm2643_vm0, %v2642_v0  ;;  %v2051_v3 = vld [vmem:[#allocation5 + $0x10] sm:$0xff]   ;;  %v2057_v4 = vld [vmem:[#allocation8] sm:$0xff]   ;;  %v2052_v5 = vld [vmem:[#allocation5 + $0x18] sm:$0xff]   ;;  %s3239_s1 = sld [smem:[#allocation52_spill]]  ;;  %s3240_s27 = sld [smem:[#allocation53_spill]] }
 0x193   :  { %1825 = vmatprep.subr.bf16.mxu1 %v2642_v0  ;;  %1841 = vmatprep.mubr.msk.bf16.mxu1 %vm2643_vm0, %v2642_v0  ;;  %v2058_v6 = vld [vmem:[#allocation8 + $0x8] sm:$0xff]   ;;  %v2053_v7 = vld [vmem:[#allocation5 + $0x20] sm:$0xff]   ;;  %v2059_v8 = vld [vmem:[#allocation8 + $0x10] sm:$0xff]   ;;  %s2644_s9 = smov [#allocation32]  }
 0x194   :  { %1806 = vmatpush3.bf16.msra.mxu0 %v2049_v1  ;;  %1826 = vmatpush3.bf16.msra.mxu1 %v2057_v4  ;;  %v2054_v9 = vld [vmem:[#allocation5 + $0x28] sm:$0xff]   ;;  %v2061_v10 = vld [vmem:[#allocation8 + $0x18] sm:$0xff]   ;;  %v2055_v11 = vld [vmem:[#allocation5 + $0x30] sm:$0xff]   ;;  %s1589_s30 = sshll.u32 %s2644_s9, 4  ;;  %s1590_s30 = int_to_ptr.vmem [resolvable:$true] %s1589_s30 }
 0x195   :  { %1807 = vmatprep.subr.bf16.mxu0 %v2642_v0  ;;  %1827 = vmatprep.subr.bf16.mxu1 %v2642_v0  ;;  %v2063_v12 = vld [vmem:[#allocation8 + $0x20] sm:$0xff]   ;;  %v2056_v13 = vld [vmem:[#allocation5 + $0x38] sm:$0xff]   ;;  %v2065_v14 = vld [vmem:[#allocation8 + $0x28] sm:$0xff]   ;;  %s2577_s8 = scalar_lea.vmem %s1590_s30, 128  ;;  %p2582_p13 = scmp.lt.s32.totalorder %s1590_s30, %s1590_s30 }
 0x196   :  { %v315_v15 = vld [vmem:[#allocation2] sm:$0xf]  ;;  %v2060_v16 = vld [vmem:[#allocation11] sm:$0xff]   ;;  %v2067_v17 = vld [vmem:[#allocation8 + $0x30] sm:$0xff]   ;;  %p2578_p12 = scmp.ne.s32.totalorder %s1590_s30, %s2577_s8  ;;  %p2583_p0 = scmp.lt.s32.totalorder %s2577_s8, %s2577_s8 }
 0x197   :  { %v2062_v18 = vld [vmem:[#allocation11 + $0x8] sm:$0xff]   ;;  %v2064_v19 = vld [vmem:[#allocation11 + $0x10] sm:$0xff]   ;;  %v2066_v20 = vld [vmem:[#allocation11 + $0x18] sm:$0xff]  }
 0x198   :  { %1808 = vmatpush3.bf16.msra.mxu0 %v2050_v2  ;;  %1828 = vmatpush3.bf16.msra.mxu1 %v2058_v6  ;;  %v2068_v21 = vld [vmem:[#allocation11 + $0x20] sm:$0xff]   ;;  %v2069_v22 = vld [vmem:[#allocation8 + $0x38] sm:$0xff]   ;;  %v2070_v23 = vld [vmem:[#allocation11 + $0x28] sm:$0xff]   ;;  %p2584_p1 = por %p2583_p0, %p2582_p13 }
 0x199   :  { %1809 = vmatprep.subr.bf16.mxu0 %v2642_v0  ;;  %1829 = vmatprep.subr.bf16.mxu1 %v2642_v0  ;;  %v2071_v24 = vld [vmem:[#allocation11 + $0x30] sm:$0xff]   ;;  %v2072_v25 = vld [vmem:[#allocation11 + $0x38] sm:$0xff]   ;;  %v2073_v31 = vld [vmem:[#allocation14] sm:$0xff]  }
 0x19a   :  { %v1607_v26 = vld [vmem:[#allocation7] ss:$0 sm:$0xff]  ;;  %v2074_v34 = vld [vmem:[#allocation14 + $0x8] sm:$0xff]   ;;  %v2075_v35 = vld [vmem:[#allocation14 + $0x10] sm:$0xff]   ;;  %p2585_p2 = pnand %p2584_p1, %p2578_p12 }
 0x19b   :  { %v2076_v37 = vld [vmem:[#allocation17] sm:$0xff]   ;;  %v2077_v39 = vld [vmem:[#allocation14 + $0x18] sm:$0xff]   ;;  %v2078_v40 = vld [vmem:[#allocation17 + $0x8] sm:$0xff]  }
 0x19c   :  { %1810 = vmatpush3.bf16.msra.mxu0 %v2051_v3  ;;  %1830 = vmatpush3.bf16.msra.mxu1 %v2059_v8  ;;  %v2079_v41 = vld [vmem:[#allocation14 + $0x20] sm:$0xff]   ;;  %v2080_v42 = vld [vmem:[#allocation17 + $0x10] sm:$0xff]   ;;  %v2081_v43 = vld [vmem:[#allocation14 + $0x28] sm:$0xff]  }
 0x19d   :  { %1811 = vmatprep.subr.bf16.mxu0 %v2642_v0  ;;  %1831 = vmatprep.subr.bf16.mxu1 %v2642_v0  ;;  %v2082_v44 = vld [vmem:[#allocation17 + $0x18] sm:$0xff]   ;;  %v2083_v45 = vld [vmem:[#allocation14 + $0x30] sm:$0xff]   ;;  %v2084_v46 = vld [vmem:[#allocation17 + $0x20] sm:$0xff]  }
 0x19e   :  { %v2085_v47 = vld [vmem:[#allocation14 + $0x38] sm:$0xff]   ;;  %v2086_v48 = vld [vmem:[#allocation17 + $0x28] sm:$0xff]  }
 0x19f   :  { %v2087_v49 = vld [vmem:[#allocation17 + $0x30] sm:$0xff]   ;;  %v2088_v50 = vld [vmem:[#allocation17 + $0x38] sm:$0xff]   ;;  %v2089_v60 = vld [vmem:[#allocation20] sm:$0xff]  }
 0x1a0   :  { %1812 = vmatpush3.bf16.msra.mxu0 %v2052_v5  ;;  %1832 = vmatpush3.bf16.msra.mxu1 %v2061_v10  ;;  %v1625_v55 = vld [vmem:[#allocation13] ss:$0 sm:$0xff]  ;;  %v2090_v63 = vld [vmem:[#allocation20 + $0x8] sm:$0xff]   ;;  %v2091_v1 = vld [vmem:[#allocation20 + $0x10] sm:$0xff]  }
 0x1a1   :  { %1813 = vmatprep.subr.bf16.mxu0 %v2642_v0  ;;  %1833 = vmatprep.subr.bf16.mxu1 %v2642_v0  ;;  %v2092_v3 = vld [vmem:[#allocation23] sm:$0xff]   ;;  %v2093_v5 = vld [vmem:[#allocation20 + $0x18] sm:$0xff]   ;;  %v2094_v6 = vld [vmem:[#allocation23 + $0x8] sm:$0xff]  }
 0x1a2   :  { %v2096_v8 = vld [vmem:[#allocation23 + $0x10] sm:$0xff]   ;;  %v2098_v10 = vld [vmem:[#allocation23 + $0x18] sm:$0xff]  }
 0x1a4   :  { %1814 = vmatpush3.bf16.msra.mxu0 %v2053_v7  ;;  %1834 = vmatpush3.bf16.msra.mxu1 %v2063_v12  ;;  %v2095_v7 = vld [vmem:[#allocation20 + $0x20] sm:$0xff]  }
 0x1a5   :  { %1815 = vmatprep.subr.bf16.mxu0 %v2642_v0  ;;  %1835 = vmatprep.subr.bf16.mxu1 %v2642_v0  ;;  %v2100_v12 = vld [vmem:[#allocation23 + $0x20] sm:$0xff]  }
 0x1a8   :  { %1816 = vmatpush3.bf16.msra.mxu0 %v2054_v9  ;;  %1836 = vmatpush3.bf16.msra.mxu1 %v2065_v14  ;;  %v2097_v9 = vld [vmem:[#allocation20 + $0x28] sm:$0xff]  }
 0x1a9   :  { %1817 = vmatprep.subr.bf16.mxu0 %v2642_v0  ;;  %1837 = vmatprep.subr.bf16.mxu1 %v2642_v0  ;;  %v2102_v14 = vld [vmem:[#allocation23 + $0x28] sm:$0xff]  }
 0x1ac   :  { %1818 = vmatpush3.bf16.msra.mxu0 %v2055_v11  ;;  %1838 = vmatpush3.bf16.msra.mxu1 %v2067_v17  ;;  %v2099_v11 = vld [vmem:[#allocation20 + $0x30] sm:$0xff]   ;;  %v1616_v17 = vld [vmem:[#allocation10] ss:$0 sm:$0xff] }
 0x1ad   :  { %1819 = vmatprep.subr.bf16.mxu0 %v2642_v0  ;;  %1839 = vmatprep.subr.bf16.mxu1 %v2642_v0 }
 0x1b0   :  { %1820 = vmatpush3.bf16.msra.mxu0 %v2056_v13  ;;  %1840 = vmatpush3.bf16.msra.mxu1 %v2069_v22  ;;  %v2101_v13 = vld [vmem:[#allocation20 + $0x38] sm:$0xff]  }
 0x1b1   :  { %1845 = vmatprep.subr.bf16.mxu0 %v2642_v0  ;;  %1865 = vmatprep.subr.bf16.mxu1 %v2642_v0 }
 0x1b3   :  { %1822 = vmatmul.mubr.bf16.vlgmr.msra.gmra.mrb[0].mxu0 %v315_v15  ;;  %v2103_v15 = vld [vmem:[#allocation23 + $0x30] sm:$0xff]  }
 0x1b4   :  { %1846 = vmatpush3.bf16.msra.mxu0 %v2060_v16  ;;  %1861 = vmatprep.mubr.msk.bf16.mxu0 %vm2643_vm0, %v2642_v0  ;;  %v2104_v16 = vld [vmem:[#allocation23 + $0x38] sm:$0xff]  }
 0x1b5   :  { %1847 = vmatprep.subr.bf16.mxu0 %v2642_v0 }
 0x1b8   :  { %1848 = vmatpush3.bf16.msra.mxu0 %v2062_v18 }
 0x1b9   :  { %1849 = vmatprep.subr.bf16.mxu0 %v2642_v0 }
 0x1bc   :  { %1850 = vmatpush3.bf16.msra.mxu0 %v2064_v19 }
 0x1bd   :  { %1851 = vmatprep.subr.bf16.mxu0 %v2642_v0 }
 0x1c0   :  { %1852 = vmatpush3.bf16.msra.mxu0 %v2066_v20  ;;  %v1634_v20 = vld [vmem:[#allocation16] ss:$0 sm:$0xff] }
 0x1c1   :  { %1853 = vmatprep.subr.bf16.mxu0 %v2642_v0 }
 0x1c4   :  { %1854 = vmatpush3.bf16.msra.mxu0 %v2068_v21 }
 0x1c5   :  { %1855 = vmatprep.subr.bf16.mxu0 %v2642_v0 }
 0x1c8   :  { %1856 = vmatpush3.bf16.msra.mxu0 %v2070_v23 }
 0x1c9   :  { %1857 = vmatprep.subr.bf16.mxu0 %v2642_v0 }
 0x1cc   :  { %1858 = vmatpush3.bf16.msra.mxu0 %v2071_v24 }
 0x1cd   :  { %1859 = vmatprep.subr.bf16.mxu0 %v2642_v0 }
 0x1d0   :  { %1860 = vmatpush3.bf16.msra.mxu0 %v2072_v25 }
 0x1d1   :  { %1885 = vmatprep.subr.bf16.mxu0 %v2642_v0 }
 0x286   :  { %v421_v27 = vpop.f32.mrb[0].mxu0 }
 0x287   :  { %v422_v28 = vadd.f32 %v1607_v26, %v421_v27  ;;  %v1823_v29 = vpop.f32.mrb[1].mxu0  ;;  %v1643_v27 = vld [vmem:[#allocation19] ss:$0 sm:$0xff] }
 0x288   :  { %v424_v30 = vpop.f32.mrb[2].mxu0 }
 0x289   :  { %v427_v32 = vpack.c.bf16 %v422_v28, %v422_v28  ;;  %2137 = vtanh.f32 %v422_v28  ;;  %v1824_v33 = vpop.f32.mrb[3].mxu0 }
 0x28a   :  { %v2105_v33 = vld [vmem:[#allocation26] sm:$0xff]  }
 0x28b   :  { %1842 = vmatmul.mubr.bf16.vlgmr.msra.gmra.mrb[0].mxu1 %v427_v32 }
 0x28c   :  { %1866 = vmatpush3.bf16.msra.mxu1 %v2073_v31  ;;  %1881 = vmatprep.mubr.msk.bf16.mxu1 %vm2643_vm0, %v2642_v0 }
 0x28d   :  { %1867 = vmatprep.subr.bf16.mxu1 %v2642_v0 }
 0x290   :  { %1868 = vmatpush3.bf16.msra.mxu1 %v2074_v34 }
 0x291   :  { %1869 = vmatprep.subr.bf16.mxu1 %v2642_v0 }
 0x293   :  { %v2138_v36 = vpop.eup %2137 }
 0x294   :  { %v544_v38 = vpack.c.bf16 %v2138_v36, %v2138_v36  ;;  %1870 = vmatpush3.bf16.msra.mxu1 %v2075_v35 }
 0x295   :  { %1871 = vmatprep.subr.bf16.mxu1 %v2642_v0 }
 0x296   :  { %1862 = vmatmul.mubr.bf16.vlgmr.msra.gmra.mrb[4].mxu0 %v544_v38 }
 0x297   :  { %1886 = vmatpush3.bf16.msra.mxu0 %v2076_v37  ;;  %1901 = vmatprep.mubr.msk.bf16.mxu0 %vm2643_vm0, %v2642_v0 }
 0x298   :  { %1872 = vmatpush3.bf16.msra.mxu1 %v2077_v39  ;;  %1887 = vmatprep.subr.bf16.mxu0 %v2642_v0  ;;  %v2106_v39 = vld [vmem:[#allocation26 + $0x8] sm:$0xff]  }
 0x299   :  { %1873 = vmatprep.subr.bf16.mxu1 %v2642_v0 }
 0x29b   :  { %1888 = vmatpush3.bf16.msra.mxu0 %v2078_v40 }
 0x29c   :  { %1874 = vmatpush3.bf16.msra.mxu1 %v2079_v41  ;;  %1889 = vmatprep.subr.bf16.mxu0 %v2642_v0 }
 0x29d   :  { %1875 = vmatprep.subr.bf16.mxu1 %v2642_v0 }
 0x29f   :  { %1890 = vmatpush3.bf16.msra.mxu0 %v2080_v42 }
 0x2a0   :  { %1876 = vmatpush3.bf16.msra.mxu1 %v2081_v43  ;;  %1891 = vmatprep.subr.bf16.mxu0 %v2642_v0  ;;  %v2107_v43 = vld [vmem:[#allocation26 + $0x10] sm:$0xff]  }
 0x2a1   :  { %1877 = vmatprep.subr.bf16.mxu1 %v2642_v0 }
 0x2a3   :  { %1892 = vmatpush3.bf16.msra.mxu0 %v2082_v44 }
 0x2a4   :  { %1878 = vmatpush3.bf16.msra.mxu1 %v2083_v45  ;;  %1893 = vmatprep.subr.bf16.mxu0 %v2642_v0  ;;  %v2108_v45 = vld [vmem:[%s3204_s17] sm:$0xff]  }
 0x2a5   :  { %1879 = vmatprep.subr.bf16.mxu1 %v2642_v0 }
 0x2a7   :  { %1894 = vmatpush3.bf16.msra.mxu0 %v2084_v46 }
 0x2a8   :  { %1880 = vmatpush3.bf16.msra.mxu1 %v2085_v47  ;;  %1895 = vmatprep.subr.bf16.mxu0 %v2642_v0  ;;  %v2109_v47 = vld [vmem:[#allocation26 + $0x18] sm:$0xff]  }
 0x2a9   :  { %1905 = vmatprep.subr.bf16.mxu1 %v2642_v0 }
 0x2ab   :  { %1896 = vmatpush3.bf16.msra.mxu0 %v2086_v48  ;;  %v2110_v48 = vld [vmem:[%s3204_s17 + $0x8] sm:$0xff]  }
 0x2ac   :  { %1897 = vmatprep.subr.bf16.mxu0 %v2642_v0 }
 0x2af   :  { %1898 = vmatpush3.bf16.msra.mxu0 %v2087_v49  ;;  %v2111_v49 = vld [vmem:[#allocation26 + $0x20] sm:$0xff]  }
 0x2b0   :  { %1899 = vmatprep.subr.bf16.mxu0 %v2642_v0 }
 0x2b3   :  { %1900 = vmatpush3.bf16.msra.mxu0 %v2088_v50  ;;  %v2112_v50 = vld [vmem:[%s3204_s17 + $0x10] sm:$0xff]  }
 0x2b4   :  { %1925 = vmatprep.subr.bf16.mxu0 %v2642_v0 }
 0x35e   :  { %v3075_v51 = vpop.f32.mrb[0].mxu1 }
 0x35f   :  { %v1843_v52 = vpop.f32.mrb[1].mxu1  ;;  %v534_v18 = vadd.f32 %v1616_v17, %v3075_v51  ;;  %v2113_v51 = vld [vmem:[#allocation26 + $0x28] sm:$0xff]  }
 0x360   :  { %v536_v53 = vpop.f32.mrb[2].mxu1  ;;  %v2114_v52 = vld [vmem:[%s3204_s17 + $0x18] sm:$0xff]  }
 0x361   :  { %v1844_v54 = vpop.f32.mrb[3].mxu1  ;;  %v539_v19 = vmul.f32 0.5, %v534_v18  ;;  %v2115_v53 = vld [vmem:[#allocation26 + $0x30] sm:$0xff]   ;;  %v2124_v18 = vld [vmem:[#allocation31] sm:$0xff]  }
 0x362   :  { %v2116_v54 = vld [vmem:[%s3204_s17 + $0x20] sm:$0xff]  }
 0x369   :  { %v650_v56 = vpop.f32.mrb[4].mxu0 }
 0x36a   :  { %v651_v57 = vadd.f32 %v1625_v55, %v650_v56  ;;  %v1863_v58 = vpop.f32.mrb[5].mxu0  ;;  %v2117_v55 = vld [vmem:[#allocation26 + $0x38] sm:$0xff]  }
 0x36b   :  { %v653_v59 = vpop.f32.mrb[6].mxu0  ;;  %v2118_v56 = vld [vmem:[%s3204_s17 + $0x28] sm:$0xff]   ;;  %v2120_v58 = vld [vmem:[%s3204_s17 + $0x38] sm:$0xff]  }
 0x36c   :  { %v656_v61 = vpack.c.bf16 %v651_v57, %v651_v57  ;;  %2139 = vtanh.f32 %v651_v57  ;;  %v1864_v62 = vpop.f32.mrb[7].mxu0  ;;  %v2119_v57 = vld [vmem:[%s3204_s17 + $0x30] sm:$0xff]   ;;  %v1652_v59 = vld [vmem:[#allocation22] ss:$0 sm:$0xff] }
 0x36d   :  { %2141 = vtanh.f32 %v539_v19 }
 0x36e   :  { %1882 = vmatmul.mubr.bf16.vlgmr.msra.gmra.mrb[4].mxu1 %v656_v61 }
 0x36f   :  { %1906 = vmatpush3.bf16.msra.mxu1 %v2089_v60  ;;  %1921 = vmatprep.mubr.msk.bf16.mxu1 %vm2643_vm0, %v2642_v0 }
 0x370   :  { %1907 = vmatprep.subr.bf16.mxu1 %v2642_v0 }
 0x373   :  { %1908 = vmatpush3.bf16.msra.mxu1 %v2090_v63 }
 0x374   :  { %1909 = vmatprep.subr.bf16.mxu1 %v2642_v0 }
 0x376   :  { %v2140_v2 = vpop.eup %2139 }
 0x377   :  { %v774_v4 = vpack.c.bf16 %v2140_v2, %v2140_v2  ;;  %1910 = vmatpush3.bf16.msra.mxu1 %v2091_v1  ;;  %v2142_v28 = vpop.eup %2141 }
 0x378   :  { %1911 = vmatprep.subr.bf16.mxu1 %v2642_v0  ;;  %v541_v34 = vadd.f32 1.0, %v2142_v28  ;;  %v2133_v28 = vld [vmem:[#allocation29 + $0x38] sm:$0xff]  }
 0x379   :  { %1902 = vmatmul.mubr.bf16.vlgmr.msra.gmra.mrb[8].mxu0 %v774_v4 }
 0x37a   :  { %1926 = vmatpush3.bf16.msra.mxu0 %v2092_v3  ;;  %1941 = vmatprep.mubr.msk.bf16.mxu0 %vm2643_vm0, %v2642_v0  ;;  %v542_v40 = vmul.f32 0.5, %v541_v34  ;;  %v1661_v3 = vld [vmem:[#allocation25] ss:$0 sm:$0xff] }
 0x37b   :  { %1912 = vmatpush3.bf16.msra.mxu1 %v2093_v5  ;;  %1927 = vmatprep.subr.bf16.mxu0 %v2642_v0 }
 0x37c   :  { %1913 = vmatprep.subr.bf16.mxu1 %v2642_v0 }
 0x37e   :  { %1928 = vmatpush3.bf16.msra.mxu0 %v2094_v6 }
 0x37f   :  { %1914 = vmatpush3.bf16.msra.mxu1 %v2095_v7  ;;  %1929 = vmatprep.subr.bf16.mxu0 %v2642_v0 }
 0x380   :  { %1915 = vmatprep.subr.bf16.mxu1 %v2642_v0 }
 0x382   :  { %1930 = vmatpush3.bf16.msra.mxu0 %v2096_v8  ;;  %v2121_v8 = vld [vmem:[#allocation29] sm:$0xff]  }
 0x383   :  { %1916 = vmatpush3.bf16.msra.mxu1 %v2097_v9  ;;  %1931 = vmatprep.subr.bf16.mxu0 %v2642_v0 }
 0x384   :  { %1917 = vmatprep.subr.bf16.mxu1 %v2642_v0 }
 0x386   :  { %1932 = vmatpush3.bf16.msra.mxu0 %v2098_v10 }
 0x387   :  { %1918 = vmatpush3.bf16.msra.mxu1 %v2099_v11  ;;  %1933 = vmatprep.subr.bf16.mxu0 %v2642_v0 }
 0x388   :  { %1919 = vmatprep.subr.bf16.mxu1 %v2642_v0 }
 0x38a   :  { %1934 = vmatpush3.bf16.msra.mxu0 %v2100_v12 }
 0x38b   :  { %1920 = vmatpush3.bf16.msra.mxu1 %v2101_v13  ;;  %1935 = vmatprep.subr.bf16.mxu0 %v2642_v0  ;;  %v2122_v13 = vld [vmem:[#allocation29 + $0x8] sm:$0xff]  }
 0x38c   :  { %1945 = vmatprep.subr.bf16.mxu1 %v2642_v0 }
 0x38e   :  { %1936 = vmatpush3.bf16.msra.mxu0 %v2102_v14 }
 0x38f   :  { %1937 = vmatprep.subr.bf16.mxu0 %v2642_v0 }
 0x392   :  { %1938 = vmatpush3.bf16.msra.mxu0 %v2103_v15 }
 0x393   :  { %1939 = vmatprep.subr.bf16.mxu0 %v2642_v0 }
 0x396   :  { %1940 = vmatpush3.bf16.msra.mxu0 %v2104_v16  ;;  %v2123_v16 = vld [vmem:[#allocation29 + $0x10] sm:$0xff]  }
 0x397   :  { %1965 = vmatprep.subr.bf16.mxu0 %v2642_v0 }
 0x441   :  { %v762_v21 = vpop.f32.mrb[4].mxu1 }
 0x442   :  { %v763_v22 = vadd.f32 %v1634_v20, %v762_v21  ;;  %v1883_v23 = vpop.f32.mrb[5].mxu1  ;;  %v2125_v20 = vld [vmem:[#allocation29 + $0x18] sm:$0xff]   ;;  %v2126_v21 = vld [vmem:[#allocation31 + $0x8] sm:$0xff]  }
 0x443   :  { %v765_v24 = vpop.f32.mrb[6].mxu1  ;;  %v2128_v23 = vld [vmem:[#allocation31 + $0x10] sm:$0xff]  }
 0x444   :  { %v768_v25 = vmul.f32 0.5, %v763_v22  ;;  %v1884_v26 = vpop.f32.mrb[7].mxu1  ;;  %v2127_v22 = vld [vmem:[#allocation29 + $0x20] sm:$0xff]   ;;  %v2129_v24 = vld [vmem:[#allocation29 + $0x28] sm:$0xff]  }
 0x445   :  { %v2131_v26 = vld [vmem:[#allocation29 + $0x30] sm:$0xff]  }
 0x446   :  { %2143 = vtanh.f32 %v768_v25  ;;  %v2130_v25 = vld [vmem:[#allocation31 + $0x18] sm:$0xff]  }
 0x44c   :  { %v880_v29 = vpop.f32.mrb[8].mxu0 }
 0x44d   :  { %v881_v30 = vadd.f32 %v1643_v27, %v880_v29  ;;  %v1903_v31 = vpop.f32.mrb[9].mxu0  ;;  %v2132_v27 = vld [vmem:[#allocation31 + $0x20] sm:$0xff]   ;;  %v2134_v29 = vld [vmem:[#allocation31 + $0x28] sm:$0xff]  }
 0x44e   :  { %v883_v32 = vpop.f32.mrb[10].mxu0  ;;  %v2136_v31 = vld [vmem:[#allocation31 + $0x38] sm:$0xff]  }
 0x44f   :  { %v886_v35 = vpack.c.bf16 %v881_v30, %v881_v30  ;;  %2145 = vtanh.f32 %v881_v30  ;;  %v1904_v36 = vpop.f32.mrb[11].mxu0  ;;  %v2135_v30 = vld [vmem:[#allocation31 + $0x30] sm:$0xff]   ;;  %v1670_v32 = vld [vmem:[#allocation28] ss:$0 sm:$0xff] }
 0x450   :  { %v2144_v37 = vpop.eup %2143 }
 0x451   :  { %v770_v38 = vadd.f32 1.0, %v2144_v37  ;;  %1922 = vmatmul.mubr.bf16.vlgmr.msra.gmra.mrb[8].mxu1 %v886_v35 }
 0x452   :  { %1946 = vmatpush3.bf16.msra.mxu1 %v2105_v33  ;;  %1961 = vmatprep.mubr.msk.bf16.mxu1 %vm2643_vm0, %v2642_v0 }
 0x453   :  { %v771_v41 = vmul.f32 0.5, %v770_v38  ;;  %1947 = vmatprep.subr.bf16.mxu1 %v2642_v0 }
 0x455   :  { %v3101_v42 = vadd.f32 %v771_v41, %v542_v40 }
 0x456   :  { %1948 = vmatpush3.bf16.msra.mxu1 %v2106_v39  ;;  %v1679_v39 = vld [vmem:[%s3205_s18] ss:$0 sm:$0xff] }
 0x457   :  { %1949 = vmatprep.subr.bf16.mxu1 %v2642_v0 }
 0x459   :  { %v2146_v44 = vpop.eup %2145 }
 0x45a   :  { %v1004_v46 = vpack.c.bf16 %v2146_v44, %v2146_v44  ;;  %1950 = vmatpush3.bf16.msra.mxu1 %v2107_v43 }
 0x45b   :  { %1951 = vmatprep.subr.bf16.mxu1 %v2642_v0 }
 0x45c   :  { %1942 = vmatmul.mubr.bf16.vlgmr.msra.gmra.mrb[12].mxu0 %v1004_v46 }
 0x45d   :  { %1966 = vmatpush3.bf16.msra.mxu0 %v2108_v45  ;;  %1981 = vmatprep.mubr.msk.bf16.mxu0 %vm2643_vm0, %v2642_v0 }
 0x45e   :  { %1952 = vmatpush3.bf16.msra.mxu1 %v2109_v47  ;;  %1967 = vmatprep.subr.bf16.mxu0 %v2642_v0 }
 0x45f   :  { %1953 = vmatprep.subr.bf16.mxu1 %v2642_v0 }
 0x461   :  { %1968 = vmatpush3.bf16.msra.mxu0 %v2110_v48 }
 0x462   :  { %1954 = vmatpush3.bf16.msra.mxu1 %v2111_v49  ;;  %1969 = vmatprep.subr.bf16.mxu0 %v2642_v0 }
 0x463   :  { %1955 = vmatprep.subr.bf16.mxu1 %v2642_v0 }
 0x465   :  { %1970 = vmatpush3.bf16.msra.mxu0 %v2112_v50 }
 0x466   :  { %1956 = vmatpush3.bf16.msra.mxu1 %v2113_v51  ;;  %1971 = vmatprep.subr.bf16.mxu0 %v2642_v0  ;;  %v1688_v51 = vld [vmem:[%s3239_s1] ss:$0 sm:$0xff] }
 0x467   :  { %1957 = vmatprep.subr.bf16.mxu1 %v2642_v0 }
 0x469   :  { %1972 = vmatpush3.bf16.msra.mxu0 %v2114_v52 }
 0x46a   :  { %1958 = vmatpush3.bf16.msra.mxu1 %v2115_v53  ;;  %1973 = vmatprep.subr.bf16.mxu0 %v2642_v0 }
 0x46b   :  { %1959 = vmatprep.subr.bf16.mxu1 %v2642_v0 }
 0x46d   :  { %1974 = vmatpush3.bf16.msra.mxu0 %v2116_v54 }
 0x46e   :  { %1960 = vmatpush3.bf16.msra.mxu1 %v2117_v55  ;;  %1975 = vmatprep.subr.bf16.mxu0 %v2642_v0 }
 0x46f   :  { %1985 = vmatprep.subr.bf16.mxu1 %v2642_v0 }
 0x471   :  { %1976 = vmatpush3.bf16.msra.mxu0 %v2118_v56 }
 0x472   :  { %1977 = vmatprep.subr.bf16.mxu0 %v2642_v0 }
 0x475   :  { %1978 = vmatpush3.bf16.msra.mxu0 %v2119_v57 }
 0x476   :  { %1979 = vmatprep.subr.bf16.mxu0 %v2642_v0 }
 0x479   :  { %1980 = vmatpush3.bf16.msra.mxu0 %v2120_v58  ;;  %v1697_v58 = vld [vmem:[%s3240_s27] ss:$0 sm:$0xff] }
 0x47a   :  { %2005 = vmatprep.subr.bf16.mxu0 %v2642_v0 }
 0x524   :  { %v992_v60 = vpop.f32.mrb[8].mxu1 }
 0x525   :  { %v993_v61 = vadd.f32 %v1652_v59, %v992_v60  ;;  %v1923_v62 = vpop.f32.mrb[9].mxu1 }
 0x526   :  { %v995_v63 = vpop.f32.mrb[10].mxu1 }
 0x527   :  { %v998_v1 = vmul.f32 0.5, %v993_v61  ;;  %v1924_v2 = vpop.f32.mrb[11].mxu1 }
 0x529   :  { %2147 = vtanh.f32 %v998_v1 }
 0x52f   :  { %v1110_v4 = vpop.f32.mrb[12].mxu0 }
 0x530   :  { %v1111_v5 = vadd.f32 %v1661_v3, %v1110_v4  ;;  %v1943_v6 = vpop.f32.mrb[13].mxu0 }
 0x531   :  { %v1113_v7 = vpop.f32.mrb[14].mxu0 }
 0x532   :  { %v1116_v9 = vpack.c.bf16 %v1111_v5, %v1111_v5  ;;  %2149 = vtanh.f32 %v1111_v5  ;;  %v1944_v10 = vpop.f32.mrb[15].mxu0 }
 0x533   :  { %v2148_v11 = vpop.eup %2147 }
 0x534   :  { %v1000_v12 = vadd.f32 1.0, %v2148_v11  ;;  %1962 = vmatmul.mubr.bf16.vlgmr.msra.gmra.mrb[12].mxu1 %v1116_v9 }
 0x535   :  { %1986 = vmatpush3.bf16.msra.mxu1 %v2121_v8  ;;  %2001 = vmatprep.mubr.msk.bf16.mxu1 %vm2643_vm0, %v2642_v0 }
 0x536   :  { %v1001_v14 = vmul.f32 0.5, %v1000_v12  ;;  %1987 = vmatprep.subr.bf16.mxu1 %v2642_v0 }
 0x538   :  { %v3148_v15 = vadd.f32 %v1001_v14, %v3101_v42 }
 0x539   :  { %1988 = vmatpush3.bf16.msra.mxu1 %v2122_v13 }
 0x53a   :  { %1989 = vmatprep.subr.bf16.mxu1 %v2642_v0 }
 0x53c   :  { %v2150_v17 = vpop.eup %2149 }
 0x53d   :  { %v1234_v19 = vpack.c.bf16 %v2150_v17, %v2150_v17  ;;  %1990 = vmatpush3.bf16.msra.mxu1 %v2123_v16 }
 0x53e   :  { %1991 = vmatprep.subr.bf16.mxu1 %v2642_v0 }
 0x53f   :  { %1982 = vmatmul.mubr.bf16.vlgmr.msra.gmra.mrb[16].mxu0 %v1234_v19 }
 0x540   :  { %2006 = vmatpush3.bf16.msra.mxu0 %v2124_v18  ;;  %2021 = vmatprep.mubr.msk.bf16.mxu0 %vm2643_vm0, %v2642_v0 }
 0x541   :  { %1992 = vmatpush3.bf16.msra.mxu1 %v2125_v20  ;;  %2007 = vmatprep.subr.bf16.mxu0 %v2642_v0 }
 0x542   :  { %1993 = vmatprep.subr.bf16.mxu1 %v2642_v0 }
 0x544   :  { %2008 = vmatpush3.bf16.msra.mxu0 %v2126_v21 }
 0x545   :  { %1994 = vmatpush3.bf16.msra.mxu1 %v2127_v22  ;;  %2009 = vmatprep.subr.bf16.mxu0 %v2642_v0 }
 0x546   :  { %1995 = vmatprep.subr.bf16.mxu1 %v2642_v0 }
 0x548   :  { %2010 = vmatpush3.bf16.msra.mxu0 %v2128_v23 }
 0x549   :  { %1996 = vmatpush3.bf16.msra.mxu1 %v2129_v24  ;;  %2011 = vmatprep.subr.bf16.mxu0 %v2642_v0 }
 0x54a   :  { %1997 = vmatprep.subr.bf16.mxu1 %v2642_v0 }
 0x54c   :  { %2012 = vmatpush3.bf16.msra.mxu0 %v2130_v25 }
 0x54d   :  { %1998 = vmatpush3.bf16.msra.mxu1 %v2131_v26  ;;  %2013 = vmatprep.subr.bf16.mxu0 %v2642_v0 }
 0x54e   :  { %1999 = vmatprep.subr.bf16.mxu1 %v2642_v0 }
 0x550   :  { %2014 = vmatpush3.bf16.msra.mxu0 %v2132_v27 }
 0x551   :  { %2000 = vmatpush3.bf16.msra.mxu1 %v2133_v28  ;;  %2015 = vmatprep.subr.bf16.mxu0 %v2642_v0 }
 0x554   :  { %2016 = vmatpush3.bf16.msra.mxu0 %v2134_v29 }
 0x555   :  { %2017 = vmatprep.subr.bf16.mxu0 %v2642_v0 }
 0x558   :  { %2018 = vmatpush3.bf16.msra.mxu0 %v2135_v30 }
 0x559   :  { %2019 = vmatprep.subr.bf16.mxu0 %v2642_v0 }
 0x55c   :  { %2020 = vmatpush3.bf16.msra.mxu0 %v2136_v31 }
 0x607   :  { %v1222_v33 = vpop.f32.mrb[12].mxu1 }
 0x608   :  { %v1223_v34 = vadd.f32 %v1670_v32, %v1222_v33  ;;  %v1963_v35 = vpop.f32.mrb[13].mxu1 }
 0x609   :  { %v1225_v36 = vpop.f32.mrb[14].mxu1 }
 0x60a   :  { %v1228_v37 = vmul.f32 0.5, %v1223_v34  ;;  %v1964_v38 = vpop.f32.mrb[15].mxu1 }
 0x60c   :  { %2151 = vtanh.f32 %v1228_v37 }
 0x612   :  { %v1340_v40 = vpop.f32.mrb[16].mxu0 }
 0x613   :  { %v1341_v41 = vadd.f32 %v1679_v39, %v1340_v40  ;;  %v1983_v42 = vpop.f32.mrb[17].mxu0 }
 0x614   :  { %v1343_v43 = vpop.f32.mrb[18].mxu0 }
 0x615   :  { %v1346_v44 = vpack.c.bf16 %v1341_v41, %v1341_v41  ;;  %2153 = vtanh.f32 %v1341_v41  ;;  %v1984_v0 = vpop.f32.mrb[19].mxu0 }
 0x616   :  { %v2152_v45 = vpop.eup %2151 }
 0x617   :  { %v1230_v46 = vadd.f32 1.0, %v2152_v45  ;;  %2002 = vmatmul.mubr.bf16.vlgmr.msra.gmra.mrb[16].mxu1 %v1346_v44 }
 0x619   :  { %v1231_v47 = vmul.f32 0.5, %v1230_v46 }
 0x61b   :  { %v1232_v48 = vadd.f32 %v1231_v47, %v3148_v15 }
 0x61f   :  { %v2154_v49 = vpop.eup %2153 }
 0x620   :  { %v1464_v50 = vpack.c.bf16 %v2154_v49, %v2154_v49 }
 0x622   :  { %2022 = vmatmul.mubr.bf16.vlgmr.msra.gmra.mrb[20].mxu0 %v1464_v50 }
 0x6ea   :  { %v1452_v52 = vpop.f32.mrb[16].mxu1 }
 0x6eb   :  { %v1453_v53 = vadd.f32 %v1688_v51, %v1452_v52  ;;  %v2003_v54 = vpop.f32.mrb[17].mxu1 }
 0x6ec   :  { %v1455_v55 = vpop.f32.mrb[18].mxu1 }
 0x6ed   :  { %v1458_v56 = vmul.f32 0.5, %v1453_v53  ;;  %v2004_v57 = vpop.f32.mrb[19].mxu1 }
 0x6ef   :  { %2155 = vtanh.f32 %v1458_v56 }
 0x6f5   :  { %v1570_v59 = vpop.f32.mrb[20].mxu0 }
 0x6f6   :  { %v1571_v60 = vadd.f32 %v1697_v58, %v1570_v59  ;;  %v2023_v61 = vpop.f32.mrb[21].mxu0 }
 0x6f7   :  { %v1573_v62 = vpop.f32.mrb[22].mxu0 }
 0x6f8   :  { %v1576_v63 = vmul.f32 0.5, %v1571_v60  ;;  %v2024_v1 = vpop.f32.mrb[23].mxu0 }
 0x6f9   :  { %v2156_v2 = vpop.eup %2155 }
 0x6fa   :  { %v1460_v3 = vadd.f32 1.0, %v2156_v2  ;;  %2157 = vtanh.f32 %v1576_v63 }
 0x6fc   :  { %v1461_v4 = vmul.f32 0.5, %v1460_v3 }
 0x6fe   :  { %v1462_v5 = vadd.f32 %v1461_v4, %v1232_v48 }
 0x704   :  { %v2158_v6 = vpop.eup %2157 }
 0x705   :  { %v1578_v7 = vadd.f32 1.0, %v2158_v6 }
 0x707   :  { %v1579_v8 = vmul.f32 0.5, %v1578_v7 }
 0x709   :  { %v1580_v9 = vadd.f32 %v1579_v8, %v1462_v5 }
 0x70b   :  { %v1581_v10 = vmul.f32 0.16666667, %v1580_v9 }
 0x70d   :  { %1582 = vst [vmem:[#allocation32] sm:$0xff] %v1581_v10 }
 0x70e   :  { %2588 = shalt.err (!%p2585_p2)
}
 0x70f   :  { %s3241_s16 = sld [smem:[#allocation54_spill]] }
 0x715   :  { %s2589_s12 = scalar_lea.hbm %s3241_s16, 128 }
 0x716   :  { %p2590_p3 = scmp.ne.s32.totalorder %s3241_s16, %s2589_s12  ;;  %p2593_p4 = scmp.lt.u32.totalorder %s2589_s12, %s3241_s16 }
 0x718   :  { %p2595_p5 = pnand %p2593_p4, %p2590_p3 }
 0x71a   :  { %2598 = shalt.err (!%p2595_p5)
}
 0x71b   :  { %1592 = dma.vmem_to_hbm [thread:$0]  %s1590_s30, 128, %s3241_s16, [#allocation4]  }
 0x71c   :  { %2619 = dma.done.wait [#allocation4], 128  }
 0x71d   :  { %2620 = vsyncadd [#allocation4], 4294967168 }
 0x71e   :  { %1596 = vsyncpa [#allocation3], 1 }
 0x71f   :  { %1597 = vsyncpa [#allocation6], 1 }
 0x720   :  { %1598 = vsyncpa [#allocation9], 1 }
 0x721   :  { %1599 = vsyncpa [#allocation12], 1 }
 0x722   :  { %1600 = vsyncpa [#allocation15], 1 }
 0x723   :  { %1601 = vsyncpa [#allocation18], 1 }
 0x724   :  { %1602 = vsyncpa [#allocation21], 1 }
 0x725   :  { %1603 = vsyncpa [#allocation24], 1 }
 0x726   :  { %1604 = vsyncpa [#allocation27], 1 }
 0x727   :  { %1605 = vsyncpa [#allocation30], 1 }
 0x728   :  { %1606 = vsyncpa [#allocation4], 1 }

</bundles_post_ra>
